<compile_context>
chip_gen: v7x
topology: tpu7x:2x2x1
jax: 0.10.0
libtpu: 0.0.40
codegen_flags: <defaults>
</compile_context>

<pallas_src>
import numpy as np
import jax
import jax.numpy as jnp
from jax import lax
from jax.experimental import pallas as pl
from jax.experimental.pallas import tpu as pltpu

_LANES = 128
_W_NAMES = ('w1c', 'bn1s', 'bn1b', 'w2c', 'bn2s', 'bn2b', 'sew1', 'sew2')
_W_NAMES_DS = _W_NAMES + ('wd', 'bnds', 'bndb')


# ---------------------------------------------------------------------------
# In-kernel helpers
# ---------------------------------------------------------------------------
def _mxu(a, w):
    """One MXU matmul: bf16 operands, f32 accumulation.  a: (M, K), w: (K, N)."""
    return lax.dot_general(a, w, (((1,), (0,)), ((), ())),
                           preferred_element_type=jnp.float32)


def _matmul3(a3, w):
    """(Bt, M, K) bf16 x (K, N) bf16 -> (Bt, M, N) f32 as one stacked-M matmul."""
    bt, m, k = a3.shape
    return _mxu(a3.reshape(bt * m, k), w).reshape(bt, m, w.shape[1])


def _taps_s1(hb):
    """Stride-1 1x3 conv taps via zero-padded sublane shifts (no MXU work).

    hb: (Bt, L, C) bf16 -> (Bt, L, 3*C) bf16 ordered [x[i-1] | x[i] | x[i+1]],
    matching the (3, Cin, Cout) -> (3*Cin, Cout) weight flattening.
    """
    bt, l, c = hb.shape
    z = jnp.zeros((bt, 1, c), hb.dtype)
    left = jnp.concatenate([z, hb[:, :l - 1, :]], axis=1)     # x[i-1], zero at i=0
    right = jnp.concatenate([hb[:, 1:, :], z], axis=1)        # x[i+1], zero at i=L-1
    return jnp.concatenate([left, hb, right], axis=-1)


def _se_block(h, wb, sel):
    """SEBasicBlock on a (Bt, L, Cin) f32 batch block -> (Bt, Lo, Cout) f32.

    sel is None for stride-1 blocks; for the strided block it is the host-built
    bf16 (3*Lo, L) selector [S0; S1; S2], S_t[i, l] = (l == s*i + t - 1).
    """
    bt, l, cin = h.shape
    hb = h.astype(jnp.bfloat16)                 # cast once per block, reused below

    if sel is None:                             # stride 1: taps from sublane shifts
        taps = _taps_s1(hb)                     # (Bt, L, 3*Cin)
        idn_b = hb                              # bf16 view for optional 1x1 downsample
        idn_f = h                               # f32 identity for the plain residual
    else:                                       # strided block: one small bf16 selector
        lo = sel.shape[0] // 3
        taps_l, cent_l = [], []
        for b in range(bt):                     # static unroll; Bt is small
            g = _mxu(sel, hb[b]).astype(jnp.bfloat16)   # exact 0/1 gather of bf16 taps
            taps_l.append(jnp.concatenate(
                [g[0:lo], g[lo:2 * lo], g[2 * lo:3 * lo]], axis=-1))
            cent_l.append(g[lo:2 * lo])         # center taps x[s*i] (downsample view)
        taps = jnp.stack(taps_l, axis=0)        # (Bt, Lo, 3*Cin)
        idn_b = jnp.stack(cent_l, axis=0)       # (Bt, Lo, Cin)
        idn_f = None

    # conv1 -> BN1 -> ReLU
    a = _matmul3(taps, wb['w1c'])
    a = jnp.maximum(a * wb['bn1s'] + wb['bn1b'], 0.0)

    # conv2 (stride 1) -> BN2
    o = _matmul3(_taps_s1(a.astype(jnp.bfloat16)), wb['w2c'])
    o = o * wb['bn2s'] + wb['bn2b']

    # SE: per-example global average pool, stacked (Bt, Cout) bottleneck MLP, gate
    y = jnp.mean(o, axis=1)                                     # (Bt, Cout) f32
    y = jnp.maximum(_mxu(y.astype(jnp.bfloat16), wb['sew1']), 0.0)
    y = jax.nn.sigmoid(_mxu(y.astype(jnp.bfloat16), wb['sew2']))
    o = o * y[:, None, :]

    # identity (optional conv1x1-stride-s downsample + folded BN), residual, ReLU
    if 'wd' in wb:
        idn = _matmul3(idn_b, wb['wd']) * wb['bnds'] + wb['bndb']
    else:
        idn = idn_f
    return jnp.maximum(o + idn, 0.0)


def _make_fused_kernel(block_cfg, n_sel):
    """block_cfg: tuple of (stride, has_downsample); n_sel = #blocks with stride != 1."""
    def kernel(*refs):
        x_ref = refs[0]
        sel_refs = refs[1:1 + n_sel]
        w_refs = refs[1 + n_sel:-1]
        out_ref = refs[-1]

        h = x_ref[...]                           # (Bt, L0, C0) f32, channels-last
        cur, si = 0, 0
        for stride, has_ds in block_cfg:
            names = _W_NAMES_DS if has_ds else _W_NAMES
            wb = {n: w_refs[cur + k][...] for k, n in enumerate(names)}
            cur += len(names)
            if stride == 1:
                h = _se_block(h, wb, None)
            else:
                h = _se_block(h, wb, sel_refs[si][...])
                si += 1

        # lane-dense bf16 store: zero-pad channels up to the 128-lane output block
        bt, lo, c = h.shape
        pad = out_ref.shape[-1] - c
        if pad:
            h = jnp.concatenate([h, jnp.zeros((bt, lo, pad), h.dtype)], axis=-1)
        out_ref[...] = h.astype(out_ref.dtype)
    return kernel


# ---------------------------------------------------------------------------
# Host-side helpers
# ---------------------------------------------------------------------------
def _stride_selector(l, stride):
    """bf16 [S0; S1; S2], S_t[i, j] = (j == stride*i + t - 1); shape (3*Lo, L)."""
    lo = (l - 1) // stride + 1
    i = np.arange(lo)[:, None]
    j = np.arange(l)[None, :]
    mats = [(j == stride * i + (t - 1)) for t in range(3)]
    return jnp.asarray(np.concatenate(mats, axis=0).astype(np.float32),
                       dtype=jnp.bfloat16)


def _cost_estimate(params, batch, l0, c0, c_pad):
    flops, trans = 0, 0
    l = l0
    for p in params:
        cin = p['w1c'].shape[0] // 3
        cout = p['w1c'].shape[1]
        cr = p['sew1'].shape[1]
        s = p['stride']
        lo = (l - 1) // s + 1
        flops += 2 * lo * (3 * cin) * cout          # conv1 (fused K = 3*Cin)
        flops += 2 * lo * (3 * cout) * cout         # conv2
        flops += 2 * 2 * cout * cr                  # SE bottleneck MLP
        if s != 1:
            flops += 2 * (3 * lo) * l * cin         # stride-s tap-gather selector
        if 'wd' in p:
            flops += 2 * lo * cin * cout            # 1x1 downsample
        trans += cout                               # sigmoid gate
        l = lo
    w_bytes = sum(int(np.prod(p[k].shape)) * p[k].dtype.itemsize
                  for p in params for k in p if k != 'stride')
    io_bytes = 4 * batch * l0 * c0 + 2 * batch * l * c_pad
    return pl.CostEstimate(flops=batch * flops,
                           transcendentals=batch * trans,
                           bytes_accessed=w_bytes + io_bytes)


# ---------------------------------------------------------------------------
# Wrapper: one pallas_call for the whole network, batch-blocked grid
# ---------------------------------------------------------------------------
def resnet_forward_nlc(x_nlc, params, batch_block=None):
    """Channels-last entry point.  x_nlc: (B, L, C) f32 -> (B, L_out, C_out) bf16."""
    b, l0, c0 = x_nlc.shape

    # Batch block: amortize per-grid-step overhead; stack M = Bt*L rows per matmul.
    if batch_block is None:
        batch_block = max(8, pl.cdiv(256, l0))
    bt = min(b, batch_block)
    nsteps = pl.cdiv(b, bt)
    b_pad = nsteps * bt
    if b_pad != b:
        x_nlc = jnp.concatenate(
            [x_nlc, jnp.zeros((b_pad - b, l0, c0), x_nlc.dtype)], axis=0)

    block_cfg = tuple((p['stride'], 'wd' in p) for p in params)
    sels, flat_w, lcur, cout = [], [], l0, c0
    for p in params:
        if p['stride'] != 1:
            sels.append(_stride_selector(lcur, p['stride']))
        names = _W_NAMES_DS if 'wd' in p else _W_NAMES
        flat_w += [p[n] for n in names]
        cout = p['w1c'].shape[1]
        lcur = (lcur - 1) // p['stride'] + 1
    lo = lcur
    c_pad = ((cout + _LANES - 1) // _LANES) * _LANES

    in_specs = [pl.BlockSpec((bt, l0, c0), lambda i: (i, 0, 0))]
    in_specs += [pl.BlockSpec(s.shape, lambda i: (0, 0)) for s in sels]
    in_specs += [pl.BlockSpec(w.shape, lambda i: (0, 0)) for w in flat_w]

    out = pl.pallas_call(
        _make_fused_kernel(block_cfg, len(sels)),
        grid=(nsteps,),                              # one batch block per grid step
        out_shape=jax.ShapeDtypeStruct((b_pad, lo, c_pad), jnp.bfloat16),
        in_specs=in_specs,
        out_specs=pl.BlockSpec((bt, lo, c_pad), lambda i: (i, 0, 0)),
        compiler_params=pltpu.CompilerParams(
            dimension_semantics=("parallel",)),      # v7x: batch blocks across 2 TCs
        cost_estimate=_cost_estimate(params, b_pad, l0, c0, c_pad),
    )(x_nlc, *sels, *flat_w)

    return out[:b, :, :cout]                         # (B, L_out, C_out) bf16


def resnet_forward(x_ncl, params, batch_block=None):
    """PyTorch nn.Conv1d layout wrapper: (B, C, L) f32 -> (B, C_out, L_out) bf16.
    Prefer resnet_forward_nlc for channels-last pipelines (no HBM transposes)."""
    y = resnet_forward_nlc(jnp.transpose(x_ncl, (0, 2, 1)), params, batch_block)
    return jnp.transpose(y, (0, 2, 1))


# ---------------------------------------------------------------------------
# Parameter construction (deterministic, synthetic, kernel-ready layout)
# ---------------------------------------------------------------------------
def _fold_bn(key, c, eps=1e-5):
    k1, k2, k3, k4 = jax.random.split(key, 4)
    gamma = 1.0 + 0.1 * jax.random.normal(k1, (c,), jnp.float32)
    beta = 0.1 * jax.random.normal(k2, (c,), jnp.float32)
    mean = 0.1 * jax.random.normal(k3, (c,), jnp.float32)
    var = 0.5 + 0.5 * jnp.abs(jax.random.normal(k4, (c,), jnp.float32))
    scale = gamma / jnp.sqrt(var + eps)
    bias = beta - mean * scale
    return scale.reshape(1, c), bias.reshape(1, c)   # pre-shaped (hoisted) broadcasts


def make_block_params(key, cin, cout, stride, reduction=16):
    ks = jax.random.split(key, 8)
    p = {'stride': stride}
    w1 = 0.1 * jax.random.normal(ks[0], (3, cin, cout), jnp.float32)
    w2 = 0.1 * jax.random.normal(ks[2], (3, cout, cout), jnp.float32)
    # conv taps pre-flattened along the contraction axis -> one K=3*Cin MXU matmul;
    # MXU operands stored in bf16 (accumulation stays f32 in-kernel).
    p['w1c'] = w1.reshape(3 * cin, cout).astype(jnp.bfloat16)
    p['w2c'] = w2.reshape(3 * cout, cout).astype(jnp.bfloat16)
    p['bn1s'], p['bn1b'] = _fold_bn(ks[1], cout)
    p['bn2s'], p['bn2b'] = _fold_bn(ks[3], cout)
    cr = max(cout // reduction, 1)
    p['sew1'] = (0.2 * jax.random.normal(ks[4], (cout, cr), jnp.float32)).astype(jnp.bfloat16)
    p['sew2'] = (0.2 * jax.random.normal(ks[5], (cr, cout), jnp.float32)).astype(jnp.bfloat16)
    if stride != 1 or cin != cout:
        p['wd'] = (0.1 * jax.random.normal(ks[6], (cin, cout), jnp.float32)).astype(jnp.bfloat16)
        p['bnds'], p['bndb'] = _fold_bn(ks[7], cout)
    return p


def make_resnet_params(key, layers=(2, 2), inplanes=32):
    # ResNet(SEBasicBlock, layers): layers1 -> planes 32 (stride 1),
    #                               layers2 -> planes 64 (stride 2, downsample)
    params, cin = [], inplanes
    for planes, nblocks, stride0 in ((32, layers[0], 1), (64, layers[1], 2)):
        for blk in range(nblocks):
            key, sub = jax.random.split(key)
            params.append(make_block_params(sub, cin, planes,
                                            stride0 if blk == 0 else 1))
            cin = planes
    return params


# ---------------------------------------------------------------------------
# Pure-JAX reference (same bf16-operand / f32-accumulate numerics)
# ---------------------------------------------------------------------------
def _bf(v):
    # bf16 operand rounding, math in f32 -- matches the kernel's bf16 MXU operands.
    return v.astype(jnp.bfloat16).astype(jnp.float32)


def _ref_block(x, p):
    stride = p['stride']

    def conv3(v, wcat, s):
        ci = v.shape[1]
        w = jnp.transpose(wcat.reshape(3, ci, -1), (2, 1, 0)).astype(jnp.float32)
        return lax.conv_general_dilated(
            _bf(v), w, (s,), ((1, 1),),
            dimension_numbers=('NCH', 'OIH', 'NCH'))

    def aff(v, s_, b_):
        return v * s_.reshape(1, -1, 1) + b_.reshape(1, -1, 1)

    h = jnp.maximum(aff(conv3(x, p['w1c'], stride), p['bn1s'], p['bn1b']), 0.0)
    o = aff(conv3(h, p['w2c'], 1), p['bn2s'], p['bn2b'])
    y = jnp.mean(o, axis=2)
    y = jnp.maximum(_bf(y) @ p['sew1'].astype(jnp.float32), 0.0)
    y = jax.nn.sigmoid(_bf(y) @ p['sew2'].astype(jnp.float32))
    o = o * y[:, :, None]
    if 'wd' in p:
        idn = jnp.einsum('ncl,co->nol', _bf(x[:, :, ::stride]),
                         p['wd'].astype(jnp.float32))
        idn = aff(idn, p['bnds'], p['bndb'])
    else:
        idn = x
    return jnp.maximum(o + idn, 0.0)


def resnet_reference(x_ncl, params):
    x = x_ncl
    for p in params:
        x = _ref_block(x, p)
    return x


# ---------------------------------------------------------------------------
if __name__ == "__main__":
    key = jax.random.PRNGKey(0)
    kx, kp = jax.random.split(key)

    B, C, L = 2, 32, 16                      # ResNet.__init__ fixes inplanes=32
    x = jax.random.normal(kx, (B, C, L), jnp.float32)
    params = make_resnet_params(kp, layers=(2, 2))

    out = jax.block_until_ready(resnet_forward(x, params))
    ref = jax.block_until_ready(resnet_reference(x, params))

    assert out.shape == (B, 64, L // 2), out.shape
    np.testing.assert_allclose(np.asarray(out.astype(jnp.float32)),
                               np.asarray(ref), rtol=2e-2, atol=2e-2)
    print("KERNEL_OK")
</pallas_src>

<mosaic_0001>
module attributes {stable_mosaic.version = 11 : i64} {
  func.func @kernel(%arg0: i32, %arg1: memref<2x16x32xf32, #tpu.memory_space<vmem>>, %arg2: memref<24x16xbf16, #tpu.memory_space<vmem>>, %arg3: memref<96x32xbf16, #tpu.memory_space<vmem>>, %arg4: memref<1x32xf32, #tpu.memory_space<vmem>>, %arg5: memref<1x32xf32, #tpu.memory_space<vmem>>, %arg6: memref<96x32xbf16, #tpu.memory_space<vmem>>, %arg7: memref<1x32xf32, #tpu.memory_space<vmem>>, %arg8: memref<1x32xf32, #tpu.memory_space<vmem>>, %arg9: memref<32x2xbf16, #tpu.memory_space<vmem>>, %arg10: memref<2x32xbf16, #tpu.memory_space<vmem>>, %arg11: memref<96x32xbf16, #tpu.memory_space<vmem>>, %arg12: memref<1x32xf32, #tpu.memory_space<vmem>>, %arg13: memref<1x32xf32, #tpu.memory_space<vmem>>, %arg14: memref<96x32xbf16, #tpu.memory_space<vmem>>, %arg15: memref<1x32xf32, #tpu.memory_space<vmem>>, %arg16: memref<1x32xf32, #tpu.memory_space<vmem>>, %arg17: memref<32x2xbf16, #tpu.memory_space<vmem>>, %arg18: memref<2x32xbf16, #tpu.memory_space<vmem>>, %arg19: memref<96x64xbf16, #tpu.memory_space<vmem>>, %arg20: memref<1x64xf32, #tpu.memory_space<vmem>>, %arg21: memref<1x64xf32, #tpu.memory_space<vmem>>, %arg22: memref<192x64xbf16, #tpu.memory_space<vmem>>, %arg23: memref<1x64xf32, #tpu.memory_space<vmem>>, %arg24: memref<1x64xf32, #tpu.memory_space<vmem>>, %arg25: memref<64x4xbf16, #tpu.memory_space<vmem>>, %arg26: memref<4x64xbf16, #tpu.memory_space<vmem>>, %arg27: memref<32x64xbf16, #tpu.memory_space<vmem>>, %arg28: memref<1x64xf32, #tpu.memory_space<vmem>>, %arg29: memref<1x64xf32, #tpu.memory_space<vmem>>, %arg30: memref<192x64xbf16, #tpu.memory_space<vmem>>, %arg31: memref<1x64xf32, #tpu.memory_space<vmem>>, %arg32: memref<1x64xf32, #tpu.memory_space<vmem>>, %arg33: memref<192x64xbf16, #tpu.memory_space<vmem>>, %arg34: memref<1x64xf32, #tpu.memory_space<vmem>>, %arg35: memref<1x64xf32, #tpu.memory_space<vmem>>, %arg36: memref<64x4xbf16, #tpu.memory_space<vmem>>, %arg37: memref<4x64xbf16, #tpu.memory_space<vmem>>, %arg38: memref<2x8x128xbf16, #tpu.memory_space<vmem>>) attributes {dimension_semantics = [#tpu.dimension_semantics<parallel>], iteration_bounds = array<i64: 1>, scalar_prefetch = 0 : i64, scratch_operands = 0 : i64, tpu.core_type = #tpu.core_type<tc>, window_params = [{transform_indices = @transform_0, window_bounds = array<i64: 2, 16, 32>}, {pipeline_mode = #tpu.pipeline_mode<synchronous>, transform_indices = @transform_1, window_bounds = array<i64: 24, 16>}, {pipeline_mode = #tpu.pipeline_mode<synchronous>, transform_indices = @transform_2, window_bounds = array<i64: 96, 32>}, {pipeline_mode = #tpu.pipeline_mode<synchronous>, transform_indices = @transform_3, window_bounds = array<i64: 1, 32>}, {pipeline_mode = #tpu.pipeline_mode<synchronous>, transform_indices = @transform_4, window_bounds = array<i64: 1, 32>}, {pipeline_mode = #tpu.pipeline_mode<synchronous>, transform_indices = @transform_5, window_bounds = array<i64: 96, 32>}, {pipeline_mode = #tpu.pipeline_mode<synchronous>, transform_indices = @transform_6, window_bounds = array<i64: 1, 32>}, {pipeline_mode = #tpu.pipeline_mode<synchronous>, transform_indices = @transform_7, window_bounds = array<i64: 1, 32>}, {pipeline_mode = #tpu.pipeline_mode<synchronous>, transform_indices = @transform_8, window_bounds = array<i64: 32, 2>}, {pipeline_mode = #tpu.pipeline_mode<synchronous>, transform_indices = @transform_9, window_bounds = array<i64: 2, 32>}, {pipeline_mode = #tpu.pipeline_mode<synchronous>, transform_indices = @transform_10, window_bounds = array<i64: 96, 32>}, {pipeline_mode = #tpu.pipeline_mode<synchronous>, transform_indices = @transform_11, window_bounds = array<i64: 1, 32>}, {pipeline_mode = #tpu.pipeline_mode<synchronous>, transform_indices = @transform_12, window_bounds = array<i64: 1, 32>}, {pipeline_mode = #tpu.pipeline_mode<synchronous>, transform_indices = @transform_13, window_bounds = array<i64: 96, 32>}, {pipeline_mode = #tpu.pipeline_mode<synchronous>, transform_indices = @transform_14, window_bounds = array<i64: 1, 32>}, {pipeline_mode = #tpu.pipeline_mode<synchronous>, transform_indices = @transform_15, window_bounds = array<i64: 1, 32>}, {pipeline_mode = #tpu.pipeline_mode<synchronous>, transform_indices = @transform_16, window_bounds = array<i64: 32, 2>}, {pipeline_mode = #tpu.pipeline_mode<synchronous>, transform_indices = @transform_17, window_bounds = array<i64: 2, 32>}, {pipeline_mode = #tpu.pipeline_mode<synchronous>, transform_indices = @transform_18, window_bounds = array<i64: 96, 64>}, {pipeline_mode = #tpu.pipeline_mode<synchronous>, transform_indices = @transform_19, window_bounds = array<i64: 1, 64>}, {pipeline_mode = #tpu.pipeline_mode<synchronous>, transform_indices = @transform_20, window_bounds = array<i64: 1, 64>}, {pipeline_mode = #tpu.pipeline_mode<synchronous>, transform_indices = @transform_21, window_bounds = array<i64: 192, 64>}, {pipeline_mode = #tpu.pipeline_mode<synchronous>, transform_indices = @transform_22, window_bounds = array<i64: 1, 64>}, {pipeline_mode = #tpu.pipeline_mode<synchronous>, transform_indices = @transform_23, window_bounds = array<i64: 1, 64>}, {pipeline_mode = #tpu.pipeline_mode<synchronous>, transform_indices = @transform_24, window_bounds = array<i64: 64, 4>}, {pipeline_mode = #tpu.pipeline_mode<synchronous>, transform_indices = @transform_25, window_bounds = array<i64: 4, 64>}, {pipeline_mode = #tpu.pipeline_mode<synchronous>, transform_indices = @transform_26, window_bounds = array<i64: 32, 64>}, {pipeline_mode = #tpu.pipeline_mode<synchronous>, transform_indices = @transform_27, window_bounds = array<i64: 1, 64>}, {pipeline_mode = #tpu.pipeline_mode<synchronous>, transform_indices = @transform_28, window_bounds = array<i64: 1, 64>}, {pipeline_mode = #tpu.pipeline_mode<synchronous>, transform_indices = @transform_29, window_bounds = array<i64: 192, 64>}, {pipeline_mode = #tpu.pipeline_mode<synchronous>, transform_indices = @transform_30, window_bounds = array<i64: 1, 64>}, {pipeline_mode = #tpu.pipeline_mode<synchronous>, transform_indices = @transform_31, window_bounds = array<i64: 1, 64>}, {pipeline_mode = #tpu.pipeline_mode<synchronous>, transform_indices = @transform_32, window_bounds = array<i64: 192, 64>}, {pipeline_mode = #tpu.pipeline_mode<synchronous>, transform_indices = @transform_33, window_bounds = array<i64: 1, 64>}, {pipeline_mode = #tpu.pipeline_mode<synchronous>, transform_indices = @transform_34, window_bounds = array<i64: 1, 64>}, {pipeline_mode = #tpu.pipeline_mode<synchronous>, transform_indices = @transform_35, window_bounds = array<i64: 64, 4>}, {pipeline_mode = #tpu.pipeline_mode<synchronous>, transform_indices = @transform_36, window_bounds = array<i64: 4, 64>}, {transform_indices = @transform_37, window_bounds = array<i64: 2, 8, 128>}]} {
    %c0 = arith.constant 0 : index
    %c0_0 = arith.constant 0 : index
    %c0_1 = arith.constant 0 : index
    %0 = vector.load %arg1[%c0, %c0_0, %c0_1] : memref<2x16x32xf32, #tpu.memory_space<vmem>>, vector<2x16x32xf32>
    %c0_2 = arith.constant 0 : index
    %c0_3 = arith.constant 0 : index
    %1 = vector.load %arg3[%c0_2, %c0_3] : memref<96x32xbf16, #tpu.memory_space<vmem>>, vector<96x32xbf16>
    %c0_4 = arith.constant 0 : index
    %c0_5 = arith.constant 0 : index
    %2 = vector.load %arg4[%c0_4, %c0_5] : memref<1x32xf32, #tpu.memory_space<vmem>>, vector<1x32xf32>
    %c0_6 = arith.constant 0 : index
    %c0_7 = arith.constant 0 : index
    %3 = vector.load %arg5[%c0_6, %c0_7] : memref<1x32xf32, #tpu.memory_space<vmem>>, vector<1x32xf32>
    %c0_8 = arith.constant 0 : index
    %c0_9 = arith.constant 0 : index
    %4 = vector.load %arg6[%c0_8, %c0_9] : memref<96x32xbf16, #tpu.memory_space<vmem>>, vector<96x32xbf16>
    %c0_10 = arith.constant 0 : index
    %c0_11 = arith.constant 0 : index
    %5 = vector.load %arg7[%c0_10, %c0_11] : memref<1x32xf32, #tpu.memory_space<vmem>>, vector<1x32xf32>
    %c0_12 = arith.constant 0 : index
    %c0_13 = arith.constant 0 : index
    %6 = vector.load %arg8[%c0_12, %c0_13] : memref<1x32xf32, #tpu.memory_space<vmem>>, vector<1x32xf32>
    %c0_14 = arith.constant 0 : index
    %c0_15 = arith.constant 0 : index
    %7 = vector.load %arg9[%c0_14, %c0_15] : memref<32x2xbf16, #tpu.memory_space<vmem>>, vector<32x2xbf16>
    %c0_16 = arith.constant 0 : index
    %c0_17 = arith.constant 0 : index
    %8 = vector.load %arg10[%c0_16, %c0_17] : memref<2x32xbf16, #tpu.memory_space<vmem>>, vector<2x32xbf16>
    %9 = arith.truncf %0 : vector<2x16x32xf32> to vector<2x16x32xbf16>
    %cst = arith.constant 0.000000e+00 : bf16
    %10 = vector.broadcast %cst : bf16 to vector<2x1x32xbf16>
    %11 = vector.extract_strided_slice %9 {offsets = [0, 0, 0], sizes = [2, 15, 32], strides = [1, 1, 1]} : vector<2x16x32xbf16> to vector<2x15x32xbf16>
    %12 = tpu.concatenate %10, %11 in 1 : vector<2x1x32xbf16>, vector<2x15x32xbf16> -> vector<2x16x32xbf16>
    %13 = vector.extract_strided_slice %9 {offsets = [0, 1, 0], sizes = [2, 15, 32], strides = [1, 1, 1]} : vector<2x16x32xbf16> to vector<2x15x32xbf16>
    %14 = tpu.concatenate %13, %10 in 1 : vector<2x15x32xbf16>, vector<2x1x32xbf16> -> vector<2x16x32xbf16>
    %15 = tpu.concatenate %12, %9, %14 in 2 : vector<2x16x32xbf16>, vector<2x16x32xbf16>, vector<2x16x32xbf16> -> vector<2x16x96xbf16>
    %16 = vector.shape_cast %15 : vector<2x16x96xbf16> to vector<32x96xbf16>
    %cst_18 = arith.constant dense<0.000000e+00> : vector<32x32xf32>
    %17 = tpu.matmul %16, %1, %cst_18 {dimension_numbers = #tpu.dot_dimension_numbers<[1], [0], [0], [1], [0, 0, 1, 1], [], []>} : vector<32x96xbf16>, vector<96x32xbf16>, vector<32x32xf32> -> vector<32x32xf32>
    %18 = vector.shape_cast %17 : vector<32x32xf32> to vector<2x16x32xf32>
    %19 = vector.shape_cast %2 : vector<1x32xf32> to vector<1x1x32xf32>
    %20 = vector.broadcast %19 : vector<1x1x32xf32> to vector<2x16x32xf32>
    %21 = arith.mulf %18, %20 : vector<2x16x32xf32>
    %22 = vector.shape_cast %3 : vector<1x32xf32> to vector<1x1x32xf32>
    %23 = vector.broadcast %22 : vector<1x1x32xf32> to vector<2x16x32xf32>
    %24 = arith.addf %21, %23 : vector<2x16x32xf32>
    %cst_19 = arith.constant 0.000000e+00 : f32
    %25 = vector.broadcast %cst_19 : f32 to vector<2x16x32xf32>
    %26 = arith.maximumf %24, %25 : vector<2x16x32xf32>
    %27 = arith.truncf %26 : vector<2x16x32xf32> to vector<2x16x32xbf16>
    %cst_20 = arith.constant 0.000000e+00 : bf16
    %28 = vector.broadcast %cst_20 : bf16 to vector<2x1x32xbf16>
    %29 = vector.extract_strided_slice %27 {offsets = [0, 0, 0], sizes = [2, 15, 32], strides = [1, 1, 1]} : vector<2x16x32xbf16> to vector<2x15x32xbf16>
    %30 = tpu.concatenate %28, %29 in 1 : vector<2x1x32xbf16>, vector<2x15x32xbf16> -> vector<2x16x32xbf16>
    %31 = vector.extract_strided_slice %27 {offsets = [0, 1, 0], sizes = [2, 15, 32], strides = [1, 1, 1]} : vector<2x16x32xbf16> to vector<2x15x32xbf16>
    %32 = tpu.concatenate %31, %28 in 1 : vector<2x15x32xbf16>, vector<2x1x32xbf16> -> vector<2x16x32xbf16>
    %33 = tpu.concatenate %30, %27, %32 in 2 : vector<2x16x32xbf16>, vector<2x16x32xbf16>, vector<2x16x32xbf16> -> vector<2x16x96xbf16>
    %34 = vector.shape_cast %33 : vector<2x16x96xbf16> to vector<32x96xbf16>
    %cst_21 = arith.constant dense<0.000000e+00> : vector<32x32xf32>
    %35 = tpu.matmul %34, %4, %cst_21 {dimension_numbers = #tpu.dot_dimension_numbers<[1], [0], [0], [1], [0, 0, 1, 1], [], []>} : vector<32x96xbf16>, vector<96x32xbf16>, vector<32x32xf32> -> vector<32x32xf32>
    %36 = vector.shape_cast %35 : vector<32x32xf32> to vector<2x16x32xf32>
    %37 = vector.shape_cast %5 : vector<1x32xf32> to vector<1x1x32xf32>
    %38 = vector.broadcast %37 : vector<1x1x32xf32> to vector<2x16x32xf32>
    %39 = arith.mulf %36, %38 : vector<2x16x32xf32>
    %40 = vector.shape_cast %6 : vector<1x32xf32> to vector<1x1x32xf32>
    %41 = vector.broadcast %40 : vector<1x1x32xf32> to vector<2x16x32xf32>
    %42 = arith.addf %39, %41 : vector<2x16x32xf32>
    %cst_22 = arith.constant dense<0.000000e+00> : vector<2x32xf32>
    %43 = vector.multi_reduction <add>, %42, %cst_22 [1] : vector<2x16x32xf32> to vector<2x32xf32>
    %cst_23 = arith.constant 1.600000e+01 : f32
    %44 = vector.broadcast %cst_23 : f32 to vector<2x32xf32>
    %45 = arith.divf %43, %44 : vector<2x32xf32>
    %46 = arith.truncf %45 : vector<2x32xf32> to vector<2x32xbf16>
    %cst_24 = arith.constant dense<0.000000e+00> : vector<2x2xf32>
    %47 = tpu.matmul %46, %7, %cst_24 {dimension_numbers = #tpu.dot_dimension_numbers<[1], [0], [0], [1], [0, 0, 1, 1], [], []>} : vector<2x32xbf16>, vector<32x2xbf16>, vector<2x2xf32> -> vector<2x2xf32>
    %cst_25 = arith.constant 0.000000e+00 : f32
    %48 = vector.broadcast %cst_25 : f32 to vector<2x2xf32>
    %49 = arith.maximumf %47, %48 : vector<2x2xf32>
    %50 = arith.truncf %49 : vector<2x2xf32> to vector<2x2xbf16>
    %cst_26 = arith.constant dense<0.000000e+00> : vector<2x32xf32>
    %51 = tpu.matmul %50, %8, %cst_26 {dimension_numbers = #tpu.dot_dimension_numbers<[1], [0], [0], [1], [0, 0, 1, 1], [], []>} : vector<2x2xbf16>, vector<2x32xbf16>, vector<2x32xf32> -> vector<2x32xf32>
    %52 = arith.negf %51 : vector<2x32xf32>
    %53 = math.exp %52 : vector<2x32xf32>
    %cst_27 = arith.constant 1.000000e+00 : f32
    %54 = vector.broadcast %cst_27 : f32 to vector<2x32xf32>
    %55 = arith.addf %54, %53 : vector<2x32xf32>
    %56 = arith.divf %54, %55 : vector<2x32xf32>
    %57 = vector.shape_cast %56 : vector<2x32xf32> to vector<2x1x32xf32>
    %58 = vector.broadcast %57 : vector<2x1x32xf32> to vector<2x16x32xf32>
    %59 = arith.mulf %42, %58 : vector<2x16x32xf32>
    %60 = arith.addf %59, %0 : vector<2x16x32xf32>
    %cst_28 = arith.constant 0.000000e+00 : f32
    %61 = vector.broadcast %cst_28 : f32 to vector<2x16x32xf32>
    %62 = arith.maximumf %60, %61 : vector<2x16x32xf32>
    %c0_29 = arith.constant 0 : index
    %c0_30 = arith.constant 0 : index
    %63 = vector.load %arg11[%c0_29, %c0_30] : memref<96x32xbf16, #tpu.memory_space<vmem>>, vector<96x32xbf16>
    %c0_31 = arith.constant 0 : index
    %c0_32 = arith.constant 0 : index
    %64 = vector.load %arg12[%c0_31, %c0_32] : memref<1x32xf32, #tpu.memory_space<vmem>>, vector<1x32xf32>
    %c0_33 = arith.constant 0 : index
    %c0_34 = arith.constant 0 : index
    %65 = vector.load %arg13[%c0_33, %c0_34] : memref<1x32xf32, #tpu.memory_space<vmem>>, vector<1x32xf32>
    %c0_35 = arith.constant 0 : index
    %c0_36 = arith.constant 0 : index
    %66 = vector.load %arg14[%c0_35, %c0_36] : memref<96x32xbf16, #tpu.memory_space<vmem>>, vector<96x32xbf16>
    %c0_37 = arith.constant 0 : index
    %c0_38 = arith.constant 0 : index
    %67 = vector.load %arg15[%c0_37, %c0_38] : memref<1x32xf32, #tpu.memory_space<vmem>>, vector<1x32xf32>
    %c0_39 = arith.constant 0 : index
    %c0_40 = arith.constant 0 : index
    %68 = vector.load %arg16[%c0_39, %c0_40] : memref<1x32xf32, #tpu.memory_space<vmem>>, vector<1x32xf32>
    %c0_41 = arith.constant 0 : index
    %c0_42 = arith.constant 0 : index
    %69 = vector.load %arg17[%c0_41, %c0_42] : memref<32x2xbf16, #tpu.memory_space<vmem>>, vector<32x2xbf16>
    %c0_43 = arith.constant 0 : index
    %c0_44 = arith.constant 0 : index
    %70 = vector.load %arg18[%c0_43, %c0_44] : memref<2x32xbf16, #tpu.memory_space<vmem>>, vector<2x32xbf16>
    %71 = arith.truncf %62 : vector<2x16x32xf32> to vector<2x16x32xbf16>
    %cst_45 = arith.constant 0.000000e+00 : bf16
    %72 = vector.broadcast %cst_45 : bf16 to vector<2x1x32xbf16>
    %73 = vector.extract_strided_slice %71 {offsets = [0, 0, 0], sizes = [2, 15, 32], strides = [1, 1, 1]} : vector<2x16x32xbf16> to vector<2x15x32xbf16>
    %74 = tpu.concatenate %72, %73 in 1 : vector<2x1x32xbf16>, vector<2x15x32xbf16> -> vector<2x16x32xbf16>
    %75 = vector.extract_strided_slice %71 {offsets = [0, 1, 0], sizes = [2, 15, 32], strides = [1, 1, 1]} : vector<2x16x32xbf16> to vector<2x15x32xbf16>
    %76 = tpu.concatenate %75, %72 in 1 : vector<2x15x32xbf16>, vector<2x1x32xbf16> -> vector<2x16x32xbf16>
    %77 = tpu.concatenate %74, %71, %76 in 2 : vector<2x16x32xbf16>, vector<2x16x32xbf16>, vector<2x16x32xbf16> -> vector<2x16x96xbf16>
    %78 = vector.shape_cast %77 : vector<2x16x96xbf16> to vector<32x96xbf16>
    %cst_46 = arith.constant dense<0.000000e+00> : vector<32x32xf32>
    %79 = tpu.matmul %78, %63, %cst_46 {dimension_numbers = #tpu.dot_dimension_numbers<[1], [0], [0], [1], [0, 0, 1, 1], [], []>} : vector<32x96xbf16>, vector<96x32xbf16>, vector<32x32xf32> -> vector<32x32xf32>
    %80 = vector.shape_cast %79 : vector<32x32xf32> to vector<2x16x32xf32>
    %81 = vector.shape_cast %64 : vector<1x32xf32> to vector<1x1x32xf32>
    %82 = vector.broadcast %81 : vector<1x1x32xf32> to vector<2x16x32xf32>
    %83 = arith.mulf %80, %82 : vector<2x16x32xf32>
    %84 = vector.shape_cast %65 : vector<1x32xf32> to vector<1x1x32xf32>
    %85 = vector.broadcast %84 : vector<1x1x32xf32> to vector<2x16x32xf32>
    %86 = arith.addf %83, %85 : vector<2x16x32xf32>
    %cst_47 = arith.constant 0.000000e+00 : f32
    %87 = vector.broadcast %cst_47 : f32 to vector<2x16x32xf32>
    %88 = arith.maximumf %86, %87 : vector<2x16x32xf32>
    %89 = arith.truncf %88 : vector<2x16x32xf32> to vector<2x16x32xbf16>
    %cst_48 = arith.constant 0.000000e+00 : bf16
    %90 = vector.broadcast %cst_48 : bf16 to vector<2x1x32xbf16>
    %91 = vector.extract_strided_slice %89 {offsets = [0, 0, 0], sizes = [2, 15, 32], strides = [1, 1, 1]} : vector<2x16x32xbf16> to vector<2x15x32xbf16>
    %92 = tpu.concatenate %90, %91 in 1 : vector<2x1x32xbf16>, vector<2x15x32xbf16> -> vector<2x16x32xbf16>
    %93 = vector.extract_strided_slice %89 {offsets = [0, 1, 0], sizes = [2, 15, 32], strides = [1, 1, 1]} : vector<2x16x32xbf16> to vector<2x15x32xbf16>
    %94 = tpu.concatenate %93, %90 in 1 : vector<2x15x32xbf16>, vector<2x1x32xbf16> -> vector<2x16x32xbf16>
    %95 = tpu.concatenate %92, %89, %94 in 2 : vector<2x16x32xbf16>, vector<2x16x32xbf16>, vector<2x16x32xbf16> -> vector<2x16x96xbf16>
    %96 = vector.shape_cast %95 : vector<2x16x96xbf16> to vector<32x96xbf16>
    %cst_49 = arith.constant dense<0.000000e+00> : vector<32x32xf32>
    %97 = tpu.matmul %96, %66, %cst_49 {dimension_numbers = #tpu.dot_dimension_numbers<[1], [0], [0], [1], [0, 0, 1, 1], [], []>} : vector<32x96xbf16>, vector<96x32xbf16>, vector<32x32xf32> -> vector<32x32xf32>
    %98 = vector.shape_cast %97 : vector<32x32xf32> to vector<2x16x32xf32>
    %99 = vector.shape_cast %67 : vector<1x32xf32> to vector<1x1x32xf32>
    %100 = vector.broadcast %99 : vector<1x1x32xf32> to vector<2x16x32xf32>
    %101 = arith.mulf %98, %100 : vector<2x16x32xf32>
    %102 = vector.shape_cast %68 : vector<1x32xf32> to vector<1x1x32xf32>
    %103 = vector.broadcast %102 : vector<1x1x32xf32> to vector<2x16x32xf32>
    %104 = arith.addf %101, %103 : vector<2x16x32xf32>
    %cst_50 = arith.constant dense<0.000000e+00> : vector<2x32xf32>
    %105 = vector.multi_reduction <add>, %104, %cst_50 [1] : vector<2x16x32xf32> to vector<2x32xf32>
    %cst_51 = arith.constant 1.600000e+01 : f32
    %106 = vector.broadcast %cst_51 : f32 to vector<2x32xf32>
    %107 = arith.divf %105, %106 : vector<2x32xf32>
    %108 = arith.truncf %107 : vector<2x32xf32> to vector<2x32xbf16>
    %cst_52 = arith.constant dense<0.000000e+00> : vector<2x2xf32>
    %109 = tpu.matmul %108, %69, %cst_52 {dimension_numbers = #tpu.dot_dimension_numbers<[1], [0], [0], [1], [0, 0, 1, 1], [], []>} : vector<2x32xbf16>, vector<32x2xbf16>, vector<2x2xf32> -> vector<2x2xf32>
    %cst_53 = arith.constant 0.000000e+00 : f32
    %110 = vector.broadcast %cst_53 : f32 to vector<2x2xf32>
    %111 = arith.maximumf %109, %110 : vector<2x2xf32>
    %112 = arith.truncf %111 : vector<2x2xf32> to vector<2x2xbf16>
    %cst_54 = arith.constant dense<0.000000e+00> : vector<2x32xf32>
    %113 = tpu.matmul %112, %70, %cst_54 {dimension_numbers = #tpu.dot_dimension_numbers<[1], [0], [0], [1], [0, 0, 1, 1], [], []>} : vector<2x2xbf16>, vector<2x32xbf16>, vector<2x32xf32> -> vector<2x32xf32>
    %114 = arith.negf %113 : vector<2x32xf32>
    %115 = math.exp %114 : vector<2x32xf32>
    %cst_55 = arith.constant 1.000000e+00 : f32
    %116 = vector.broadcast %cst_55 : f32 to vector<2x32xf32>
    %117 = arith.addf %116, %115 : vector<2x32xf32>
    %118 = arith.divf %116, %117 : vector<2x32xf32>
    %119 = vector.shape_cast %118 : vector<2x32xf32> to vector<2x1x32xf32>
    %120 = vector.broadcast %119 : vector<2x1x32xf32> to vector<2x16x32xf32>
    %121 = arith.mulf %104, %120 : vector<2x16x32xf32>
    %122 = arith.addf %121, %62 : vector<2x16x32xf32>
    %cst_56 = arith.constant 0.000000e+00 : f32
    %123 = vector.broadcast %cst_56 : f32 to vector<2x16x32xf32>
    %124 = arith.maximumf %122, %123 : vector<2x16x32xf32>
    %c0_57 = arith.constant 0 : index
    %c0_58 = arith.constant 0 : index
    %125 = vector.load %arg19[%c0_57, %c0_58] : memref<96x64xbf16, #tpu.memory_space<vmem>>, vector<96x64xbf16>
    %c0_59 = arith.constant 0 : index
    %c0_60 = arith.constant 0 : index
    %126 = vector.load %arg20[%c0_59, %c0_60] : memref<1x64xf32, #tpu.memory_space<vmem>>, vector<1x64xf32>
    %c0_61 = arith.constant 0 : index
    %c0_62 = arith.constant 0 : index
    %127 = vector.load %arg21[%c0_61, %c0_62] : memref<1x64xf32, #tpu.memory_space<vmem>>, vector<1x64xf32>
    %c0_63 = arith.constant 0 : index
    %c0_64 = arith.constant 0 : index
    %128 = vector.load %arg22[%c0_63, %c0_64] : memref<192x64xbf16, #tpu.memory_space<vmem>>, vector<192x64xbf16>
    %c0_65 = arith.constant 0 : index
    %c0_66 = arith.constant 0 : index
    %129 = vector.load %arg23[%c0_65, %c0_66] : memref<1x64xf32, #tpu.memory_space<vmem>>, vector<1x64xf32>
    %c0_67 = arith.constant 0 : index
    %c0_68 = arith.constant 0 : index
    %130 = vector.load %arg24[%c0_67, %c0_68] : memref<1x64xf32, #tpu.memory_space<vmem>>, vector<1x64xf32>
    %c0_69 = arith.constant 0 : index
    %c0_70 = arith.constant 0 : index
    %131 = vector.load %arg25[%c0_69, %c0_70] : memref<64x4xbf16, #tpu.memory_space<vmem>>, vector<64x4xbf16>
    %c0_71 = arith.constant 0 : index
    %c0_72 = arith.constant 0 : index
    %132 = vector.load %arg26[%c0_71, %c0_72] : memref<4x64xbf16, #tpu.memory_space<vmem>>, vector<4x64xbf16>
    %c0_73 = arith.constant 0 : index
    %c0_74 = arith.constant 0 : index
    %133 = vector.load %arg27[%c0_73, %c0_74] : memref<32x64xbf16, #tpu.memory_space<vmem>>, vector<32x64xbf16>
    %c0_75 = arith.constant 0 : index
    %c0_76 = arith.constant 0 : index
    %134 = vector.load %arg28[%c0_75, %c0_76] : memref<1x64xf32, #tpu.memory_space<vmem>>, vector<1x64xf32>
    %c0_77 = arith.constant 0 : index
    %c0_78 = arith.constant 0 : index
    %135 = vector.load %arg29[%c0_77, %c0_78] : memref<1x64xf32, #tpu.memory_space<vmem>>, vector<1x64xf32>
    %c0_79 = arith.constant 0 : index
    %c0_80 = arith.constant 0 : index
    %136 = vector.load %arg2[%c0_79, %c0_80] : memref<24x16xbf16, #tpu.memory_space<vmem>>, vector<24x16xbf16>
    %137 = arith.truncf %124 : vector<2x16x32xf32> to vector<2x16x32xbf16>
    %138 = vector.extract_strided_slice %137 {offsets = [0, 0, 0], sizes = [1, 16, 32], strides = [1, 1, 1]} : vector<2x16x32xbf16> to vector<1x16x32xbf16>
    %139 = vector.shape_cast %138 : vector<1x16x32xbf16> to vector<16x32xbf16>
    %cst_81 = arith.constant dense<0.000000e+00> : vector<24x32xf32>
    %140 = tpu.matmul %136, %139, %cst_81 {dimension_numbers = #tpu.dot_dimension_numbers<[1], [0], [0], [1], [0, 0, 1, 1], [], []>} : vector<24x16xbf16>, vector<16x32xbf16>, vector<24x32xf32> -> vector<24x32xf32>
    %141 = arith.truncf %140 : vector<24x32xf32> to vector<24x32xbf16>
    %142 = vector.extract_strided_slice %141 {offsets = [0, 0], sizes = [8, 32], strides = [1, 1]} : vector<24x32xbf16> to vector<8x32xbf16>
    %143 = vector.extract_strided_slice %141 {offsets = [8, 0], sizes = [8, 32], strides = [1, 1]} : vector<24x32xbf16> to vector<8x32xbf16>
    %144 = vector.extract_strided_slice %141 {offsets = [16, 0], sizes = [8, 32], strides = [1, 1]} : vector<24x32xbf16> to vector<8x32xbf16>
    %145 = tpu.concatenate %142, %143, %144 in 1 : vector<8x32xbf16>, vector<8x32xbf16>, vector<8x32xbf16> -> vector<8x96xbf16>
    %146 = vector.extract_strided_slice %141 {offsets = [8, 0], sizes = [8, 32], strides = [1, 1]} : vector<24x32xbf16> to vector<8x32xbf16>
    %147 = vector.extract_strided_slice %137 {offsets = [1, 0, 0], sizes = [1, 16, 32], strides = [1, 1, 1]} : vector<2x16x32xbf16> to vector<1x16x32xbf16>
    %148 = vector.shape_cast %147 : vector<1x16x32xbf16> to vector<16x32xbf16>
    %cst_82 = arith.constant dense<0.000000e+00> : vector<24x32xf32>
    %149 = tpu.matmul %136, %148, %cst_82 {dimension_numbers = #tpu.dot_dimension_numbers<[1], [0], [0], [1], [0, 0, 1, 1], [], []>} : vector<24x16xbf16>, vector<16x32xbf16>, vector<24x32xf32> -> vector<24x32xf32>
    %150 = arith.truncf %149 : vector<24x32xf32> to vector<24x32xbf16>
    %151 = vector.extract_strided_slice %150 {offsets = [0, 0], sizes = [8, 32], strides = [1, 1]} : vector<24x32xbf16> to vector<8x32xbf16>
    %152 = vector.extract_strided_slice %150 {offsets = [8, 0], sizes = [8, 32], strides = [1, 1]} : vector<24x32xbf16> to vector<8x32xbf16>
    %153 = vector.extract_strided_slice %150 {offsets = [16, 0], sizes = [8, 32], strides = [1, 1]} : vector<24x32xbf16> to vector<8x32xbf16>
    %154 = tpu.concatenate %151, %152, %153 in 1 : vector<8x32xbf16>, vector<8x32xbf16>, vector<8x32xbf16> -> vector<8x96xbf16>
    %155 = vector.extract_strided_slice %150 {offsets = [8, 0], sizes = [8, 32], strides = [1, 1]} : vector<24x32xbf16> to vector<8x32xbf16>
    %156 = vector.shape_cast %145 : vector<8x96xbf16> to vector<1x8x96xbf16>
    %157 = vector.shape_cast %154 : vector<8x96xbf16> to vector<1x8x96xbf16>
    %158 = tpu.concatenate %156, %157 in 0 : vector<1x8x96xbf16>, vector<1x8x96xbf16> -> vector<2x8x96xbf16>
    %159 = vector.shape_cast %146 : vector<8x32xbf16> to vector<1x8x32xbf16>
    %160 = vector.shape_cast %155 : vector<8x32xbf16> to vector<1x8x32xbf16>
    %161 = tpu.concatenate %159, %160 in 0 : vector<1x8x32xbf16>, vector<1x8x32xbf16> -> vector<2x8x32xbf16>
    %162 = vector.shape_cast %158 : vector<2x8x96xbf16> to vector<16x96xbf16>
    %cst_83 = arith.constant dense<0.000000e+00> : vector<16x64xf32>
    %163 = tpu.matmul %162, %125, %cst_83 {dimension_numbers = #tpu.dot_dimension_numbers<[1], [0], [0], [1], [0, 0, 1, 1], [], []>} : vector<16x96xbf16>, vector<96x64xbf16>, vector<16x64xf32> -> vector<16x64xf32>
    %164 = vector.shape_cast %163 : vector<16x64xf32> to vector<2x8x64xf32>
    %165 = vector.shape_cast %126 : vector<1x64xf32> to vector<1x1x64xf32>
    %166 = vector.broadcast %165 : vector<1x1x64xf32> to vector<2x8x64xf32>
    %167 = arith.mulf %164, %166 : vector<2x8x64xf32>
    %168 = vector.shape_cast %127 : vector<1x64xf32> to vector<1x1x64xf32>
    %169 = vector.broadcast %168 : vector<1x1x64xf32> to vector<2x8x64xf32>
    %170 = arith.addf %167, %169 : vector<2x8x64xf32>
    %cst_84 = arith.constant 0.000000e+00 : f32
    %171 = vector.broadcast %cst_84 : f32 to vector<2x8x64xf32>
    %172 = arith.maximumf %170, %171 : vector<2x8x64xf32>
    %173 = arith.truncf %172 : vector<2x8x64xf32> to vector<2x8x64xbf16>
    %cst_85 = arith.constant 0.000000e+00 : bf16
    %174 = vector.broadcast %cst_85 : bf16 to vector<2x1x64xbf16>
    %175 = vector.extract_strided_slice %173 {offsets = [0, 0, 0], sizes = [2, 7, 64], strides = [1, 1, 1]} : vector<2x8x64xbf16> to vector<2x7x64xbf16>
    %176 = tpu.concatenate %174, %175 in 1 : vector<2x1x64xbf16>, vector<2x7x64xbf16> -> vector<2x8x64xbf16>
    %177 = vector.extract_strided_slice %173 {offsets = [0, 1, 0], sizes = [2, 7, 64], strides = [1, 1, 1]} : vector<2x8x64xbf16> to vector<2x7x64xbf16>
    %178 = tpu.concatenate %177, %174 in 1 : vector<2x7x64xbf16>, vector<2x1x64xbf16> -> vector<2x8x64xbf16>
    %179 = tpu.concatenate %176, %173, %178 in 2 : vector<2x8x64xbf16>, vector<2x8x64xbf16>, vector<2x8x64xbf16> -> vector<2x8x192xbf16>
    %180 = vector.shape_cast %179 : vector<2x8x192xbf16> to vector<16x192xbf16>
    %cst_86 = arith.constant dense<0.000000e+00> : vector<16x64xf32>
    %181 = tpu.matmul %180, %128, %cst_86 {dimension_numbers = #tpu.dot_dimension_numbers<[1], [0], [0], [1], [0, 0, 1, 1], [], []>} : vector<16x192xbf16>, vector<192x64xbf16>, vector<16x64xf32> -> vector<16x64xf32>
    %182 = vector.shape_cast %181 : vector<16x64xf32> to vector<2x8x64xf32>
    %183 = vector.shape_cast %129 : vector<1x64xf32> to vector<1x1x64xf32>
    %184 = vector.broadcast %183 : vector<1x1x64xf32> to vector<2x8x64xf32>
    %185 = arith.mulf %182, %184 : vector<2x8x64xf32>
    %186 = vector.shape_cast %130 : vector<1x64xf32> to vector<1x1x64xf32>
    %187 = vector.broadcast %186 : vector<1x1x64xf32> to vector<2x8x64xf32>
    %188 = arith.addf %185, %187 : vector<2x8x64xf32>
    %cst_87 = arith.constant dense<0.000000e+00> : vector<2x64xf32>
    %189 = vector.multi_reduction <add>, %188, %cst_87 [1] : vector<2x8x64xf32> to vector<2x64xf32>
    %cst_88 = arith.constant 8.000000e+00 : f32
    %190 = vector.broadcast %cst_88 : f32 to vector<2x64xf32>
    %191 = arith.divf %189, %190 : vector<2x64xf32>
    %192 = arith.truncf %191 : vector<2x64xf32> to vector<2x64xbf16>
    %cst_89 = arith.constant dense<0.000000e+00> : vector<2x4xf32>
    %193 = tpu.matmul %192, %131, %cst_89 {dimension_numbers = #tpu.dot_dimension_numbers<[1], [0], [0], [1], [0, 0, 1, 1], [], []>} : vector<2x64xbf16>, vector<64x4xbf16>, vector<2x4xf32> -> vector<2x4xf32>
    %cst_90 = arith.constant 0.000000e+00 : f32
    %194 = vector.broadcast %cst_90 : f32 to vector<2x4xf32>
    %195 = arith.maximumf %193, %194 : vector<2x4xf32>
    %196 = arith.truncf %195 : vector<2x4xf32> to vector<2x4xbf16>
    %cst_91 = arith.constant dense<0.000000e+00> : vector<2x64xf32>
    %197 = tpu.matmul %196, %132, %cst_91 {dimension_numbers = #tpu.dot_dimension_numbers<[1], [0], [0], [1], [0, 0, 1, 1], [], []>} : vector<2x4xbf16>, vector<4x64xbf16>, vector<2x64xf32> -> vector<2x64xf32>
    %198 = arith.negf %197 : vector<2x64xf32>
    %199 = math.exp %198 : vector<2x64xf32>
    %cst_92 = arith.constant 1.000000e+00 : f32
    %200 = vector.broadcast %cst_92 : f32 to vector<2x64xf32>
    %201 = arith.addf %200, %199 : vector<2x64xf32>
    %202 = arith.divf %200, %201 : vector<2x64xf32>
    %203 = vector.shape_cast %202 : vector<2x64xf32> to vector<2x1x64xf32>
    %204 = vector.broadcast %203 : vector<2x1x64xf32> to vector<2x8x64xf32>
    %205 = arith.mulf %188, %204 : vector<2x8x64xf32>
    %206 = vector.shape_cast %161 : vector<2x8x32xbf16> to vector<16x32xbf16>
    %cst_93 = arith.constant dense<0.000000e+00> : vector<16x64xf32>
    %207 = tpu.matmul %206, %133, %cst_93 {dimension_numbers = #tpu.dot_dimension_numbers<[1], [0], [0], [1], [0, 0, 1, 1], [], []>} : vector<16x32xbf16>, vector<32x64xbf16>, vector<16x64xf32> -> vector<16x64xf32>
    %208 = vector.shape_cast %207 : vector<16x64xf32> to vector<2x8x64xf32>
    %209 = vector.shape_cast %134 : vector<1x64xf32> to vector<1x1x64xf32>
    %210 = vector.broadcast %209 : vector<1x1x64xf32> to vector<2x8x64xf32>
    %211 = arith.mulf %208, %210 : vector<2x8x64xf32>
    %212 = vector.shape_cast %135 : vector<1x64xf32> to vector<1x1x64xf32>
    %213 = vector.broadcast %212 : vector<1x1x64xf32> to vector<2x8x64xf32>
    %214 = arith.addf %211, %213 : vector<2x8x64xf32>
    %215 = arith.addf %205, %214 : vector<2x8x64xf32>
    %cst_94 = arith.constant 0.000000e+00 : f32
    %216 = vector.broadcast %cst_94 : f32 to vector<2x8x64xf32>
    %217 = arith.maximumf %215, %216 : vector<2x8x64xf32>
    %c0_95 = arith.constant 0 : index
    %c0_96 = arith.constant 0 : index
    %218 = vector.load %arg30[%c0_95, %c0_96] : memref<192x64xbf16, #tpu.memory_space<vmem>>, vector<192x64xbf16>
    %c0_97 = arith.constant 0 : index
    %c0_98 = arith.constant 0 : index
    %219 = vector.load %arg31[%c0_97, %c0_98] : memref<1x64xf32, #tpu.memory_space<vmem>>, vector<1x64xf32>
    %c0_99 = arith.constant 0 : index
    %c0_100 = arith.constant 0 : index
    %220 = vector.load %arg32[%c0_99, %c0_100] : memref<1x64xf32, #tpu.memory_space<vmem>>, vector<1x64xf32>
    %c0_101 = arith.constant 0 : index
    %c0_102 = arith.constant 0 : index
    %221 = vector.load %arg33[%c0_101, %c0_102] : memref<192x64xbf16, #tpu.memory_space<vmem>>, vector<192x64xbf16>
    %c0_103 = arith.constant 0 : index
    %c0_104 = arith.constant 0 : index
    %222 = vector.load %arg34[%c0_103, %c0_104] : memref<1x64xf32, #tpu.memory_space<vmem>>, vector<1x64xf32>
    %c0_105 = arith.constant 0 : index
    %c0_106 = arith.constant 0 : index
    %223 = vector.load %arg35[%c0_105, %c0_106] : memref<1x64xf32, #tpu.memory_space<vmem>>, vector<1x64xf32>
    %c0_107 = arith.constant 0 : index
    %c0_108 = arith.constant 0 : index
    %224 = vector.load %arg36[%c0_107, %c0_108] : memref<64x4xbf16, #tpu.memory_space<vmem>>, vector<64x4xbf16>
    %c0_109 = arith.constant 0 : index
    %c0_110 = arith.constant 0 : index
    %225 = vector.load %arg37[%c0_109, %c0_110] : memref<4x64xbf16, #tpu.memory_space<vmem>>, vector<4x64xbf16>
    %226 = arith.truncf %217 : vector<2x8x64xf32> to vector<2x8x64xbf16>
    %cst_111 = arith.constant 0.000000e+00 : bf16
    %227 = vector.broadcast %cst_111 : bf16 to vector<2x1x64xbf16>
    %228 = vector.extract_strided_slice %226 {offsets = [0, 0, 0], sizes = [2, 7, 64], strides = [1, 1, 1]} : vector<2x8x64xbf16> to vector<2x7x64xbf16>
    %229 = tpu.concatenate %227, %228 in 1 : vector<2x1x64xbf16>, vector<2x7x64xbf16> -> vector<2x8x64xbf16>
    %230 = vector.extract_strided_slice %226 {offsets = [0, 1, 0], sizes = [2, 7, 64], strides = [1, 1, 1]} : vector<2x8x64xbf16> to vector<2x7x64xbf16>
    %231 = tpu.concatenate %230, %227 in 1 : vector<2x7x64xbf16>, vector<2x1x64xbf16> -> vector<2x8x64xbf16>
    %232 = tpu.concatenate %229, %226, %231 in 2 : vector<2x8x64xbf16>, vector<2x8x64xbf16>, vector<2x8x64xbf16> -> vector<2x8x192xbf16>
    %233 = vector.shape_cast %232 : vector<2x8x192xbf16> to vector<16x192xbf16>
    %cst_112 = arith.constant dense<0.000000e+00> : vector<16x64xf32>
    %234 = tpu.matmul %233, %218, %cst_112 {dimension_numbers = #tpu.dot_dimension_numbers<[1], [0], [0], [1], [0, 0, 1, 1], [], []>} : vector<16x192xbf16>, vector<192x64xbf16>, vector<16x64xf32> -> vector<16x64xf32>
    %235 = vector.shape_cast %234 : vector<16x64xf32> to vector<2x8x64xf32>
    %236 = vector.shape_cast %219 : vector<1x64xf32> to vector<1x1x64xf32>
    %237 = vector.broadcast %236 : vector<1x1x64xf32> to vector<2x8x64xf32>
    %238 = arith.mulf %235, %237 : vector<2x8x64xf32>
    %239 = vector.shape_cast %220 : vector<1x64xf32> to vector<1x1x64xf32>
    %240 = vector.broadcast %239 : vector<1x1x64xf32> to vector<2x8x64xf32>
    %241 = arith.addf %238, %240 : vector<2x8x64xf32>
    %cst_113 = arith.constant 0.000000e+00 : f32
    %242 = vector.broadcast %cst_113 : f32 to vector<2x8x64xf32>
    %243 = arith.maximumf %241, %242 : vector<2x8x64xf32>
    %244 = arith.truncf %243 : vector<2x8x64xf32> to vector<2x8x64xbf16>
    %cst_114 = arith.constant 0.000000e+00 : bf16
    %245 = vector.broadcast %cst_114 : bf16 to vector<2x1x64xbf16>
    %246 = vector.extract_strided_slice %244 {offsets = [0, 0, 0], sizes = [2, 7, 64], strides = [1, 1, 1]} : vector<2x8x64xbf16> to vector<2x7x64xbf16>
    %247 = tpu.concatenate %245, %246 in 1 : vector<2x1x64xbf16>, vector<2x7x64xbf16> -> vector<2x8x64xbf16>
    %248 = vector.extract_strided_slice %244 {offsets = [0, 1, 0], sizes = [2, 7, 64], strides = [1, 1, 1]} : vector<2x8x64xbf16> to vector<2x7x64xbf16>
    %249 = tpu.concatenate %248, %245 in 1 : vector<2x7x64xbf16>, vector<2x1x64xbf16> -> vector<2x8x64xbf16>
    %250 = tpu.concatenate %247, %244, %249 in 2 : vector<2x8x64xbf16>, vector<2x8x64xbf16>, vector<2x8x64xbf16> -> vector<2x8x192xbf16>
    %251 = vector.shape_cast %250 : vector<2x8x192xbf16> to vector<16x192xbf16>
    %cst_115 = arith.constant dense<0.000000e+00> : vector<16x64xf32>
    %252 = tpu.matmul %251, %221, %cst_115 {dimension_numbers = #tpu.dot_dimension_numbers<[1], [0], [0], [1], [0, 0, 1, 1], [], []>} : vector<16x192xbf16>, vector<192x64xbf16>, vector<16x64xf32> -> vector<16x64xf32>
    %253 = vector.shape_cast %252 : vector<16x64xf32> to vector<2x8x64xf32>
    %254 = vector.shape_cast %222 : vector<1x64xf32> to vector<1x1x64xf32>
    %255 = vector.broadcast %254 : vector<1x1x64xf32> to vector<2x8x64xf32>
    %256 = arith.mulf %253, %255 : vector<2x8x64xf32>
    %257 = vector.shape_cast %223 : vector<1x64xf32> to vector<1x1x64xf32>
    %258 = vector.broadcast %257 : vector<1x1x64xf32> to vector<2x8x64xf32>
    %259 = arith.addf %256, %258 : vector<2x8x64xf32>
    %cst_116 = arith.constant dense<0.000000e+00> : vector<2x64xf32>
    %260 = vector.multi_reduction <add>, %259, %cst_116 [1] : vector<2x8x64xf32> to vector<2x64xf32>
    %cst_117 = arith.constant 8.000000e+00 : f32
    %261 = vector.broadcast %cst_117 : f32 to vector<2x64xf32>
    %262 = arith.divf %260, %261 : vector<2x64xf32>
    %263 = arith.truncf %262 : vector<2x64xf32> to vector<2x64xbf16>
    %cst_118 = arith.constant dense<0.000000e+00> : vector<2x4xf32>
    %264 = tpu.matmul %263, %224, %cst_118 {dimension_numbers = #tpu.dot_dimension_numbers<[1], [0], [0], [1], [0, 0, 1, 1], [], []>} : vector<2x64xbf16>, vector<64x4xbf16>, vector<2x4xf32> -> vector<2x4xf32>
    %cst_119 = arith.constant 0.000000e+00 : f32
    %265 = vector.broadcast %cst_119 : f32 to vector<2x4xf32>
    %266 = arith.maximumf %264, %265 : vector<2x4xf32>
    %267 = arith.truncf %266 : vector<2x4xf32> to vector<2x4xbf16>
    %cst_120 = arith.constant dense<0.000000e+00> : vector<2x64xf32>
    %268 = tpu.matmul %267, %225, %cst_120 {dimension_numbers = #tpu.dot_dimension_numbers<[1], [0], [0], [1], [0, 0, 1, 1], [], []>} : vector<2x4xbf16>, vector<4x64xbf16>, vector<2x64xf32> -> vector<2x64xf32>
    %269 = arith.negf %268 : vector<2x64xf32>
    %270 = math.exp %269 : vector<2x64xf32>
    %cst_121 = arith.constant 1.000000e+00 : f32
    %271 = vector.broadcast %cst_121 : f32 to vector<2x64xf32>
    %272 = arith.addf %271, %270 : vector<2x64xf32>
    %273 = arith.divf %271, %272 : vector<2x64xf32>
    %274 = vector.shape_cast %273 : vector<2x64xf32> to vector<2x1x64xf32>
    %275 = vector.broadcast %274 : vector<2x1x64xf32> to vector<2x8x64xf32>
    %276 = arith.mulf %259, %275 : vector<2x8x64xf32>
    %277 = arith.addf %276, %217 : vector<2x8x64xf32>
    %cst_122 = arith.constant 0.000000e+00 : f32
    %278 = vector.broadcast %cst_122 : f32 to vector<2x8x64xf32>
    %279 = arith.maximumf %277, %278 : vector<2x8x64xf32>
    %cst_123 = arith.constant 0.000000e+00 : f32
    %280 = vector.broadcast %cst_123 : f32 to vector<2x8x64xf32>
    %281 = tpu.concatenate %279, %280 in 2 : vector<2x8x64xf32>, vector<2x8x64xf32> -> vector<2x8x128xf32>
    %282 = arith.truncf %281 : vector<2x8x128xf32> to vector<2x8x128xbf16>
    %c0_124 = arith.constant 0 : index
    %c0_125 = arith.constant 0 : index
    %c0_126 = arith.constant 0 : index
    %283 = vector.load %arg38[%c0_124, %c0_125, %c0_126] : memref<2x8x128xbf16, #tpu.memory_space<vmem>>, vector<2x8x128xbf16>
    tpu.vector_store %arg38[%c0_124, %c0_125, %c0_126], %282 {strides = array<i32>} : memref<2x8x128xbf16, #tpu.memory_space<vmem>>, vector<2x8x128xbf16>,
    return
  }
  func.func @transform_0(%arg0: i32) -> (i32, i32, i32) {
    %c0_i32 = arith.constant 0 : i32
    %c0_i32_0 = arith.constant 0 : i32
    %c0_i32_1 = arith.constant 0 : i32
    return %arg0, %c0_i32, %c0_i32_0 : i32, i32, i32
  }
  func.func @transform_1(%arg0: i32) -> (i32, i32) {
    %c0_i32 = arith.constant 0 : i32
    %c0_i32_0 = arith.constant 0 : i32
    %c0_i32_1 = arith.constant 0 : i32
    return %c0_i32, %c0_i32_0 : i32, i32
  }
  func.func @transform_2(%arg0: i32) -> (i32, i32) {
    %c0_i32 = arith.constant 0 : i32
    %c0_i32_0 = arith.constant 0 : i32
    %c0_i32_1 = arith.constant 0 : i32
    return %c0_i32, %c0_i32_0 : i32, i32
  }
  func.func @transform_3(%arg0: i32) -> (i32, i32) {
    %c0_i32 = arith.constant 0 : i32
    %c0_i32_0 = arith.constant 0 : i32
    %c0_i32_1 = arith.constant 0 : i32
    return %c0_i32, %c0_i32_0 : i32, i32
  }
  func.func @transform_4(%arg0: i32) -> (i32, i32) {
    %c0_i32 = arith.constant 0 : i32
    %c0_i32_0 = arith.constant 0 : i32
    %c0_i32_1 = arith.constant 0 : i32
    return %c0_i32, %c0_i32_0 : i32, i32
  }
  func.func @transform_5(%arg0: i32) -> (i32, i32) {
    %c0_i32 = arith.constant 0 : i32
    %c0_i32_0 = arith.constant 0 : i32
    %c0_i32_1 = arith.constant 0 : i32
    return %c0_i32, %c0_i32_0 : i32, i32
  }
  func.func @transform_6(%arg0: i32) -> (i32, i32) {
    %c0_i32 = arith.constant 0 : i32
    %c0_i32_0 = arith.constant 0 : i32
    %c0_i32_1 = arith.constant 0 : i32
    return %c0_i32, %c0_i32_0 : i32, i32
  }
  func.func @transform_7(%arg0: i32) -> (i32, i32) {
    %c0_i32 = arith.constant 0 : i32
    %c0_i32_0 = arith.constant 0 : i32
    %c0_i32_1 = arith.constant 0 : i32
    return %c0_i32, %c0_i32_0 : i32, i32
  }
  func.func @transform_8(%arg0: i32) -> (i32, i32) {
    %c0_i32 = arith.constant 0 : i32
    %c0_i32_0 = arith.constant 0 : i32
    %c0_i32_1 = arith.constant 0 : i32
    return %c0_i32, %c0_i32_0 : i32, i32
  }
  func.func @transform_9(%arg0: i32) -> (i32, i32) {
    %c0_i32 = arith.constant 0 : i32
    %c0_i32_0 = arith.constant 0 : i32
    %c0_i32_1 = arith.constant 0 : i32
    return %c0_i32, %c0_i32_0 : i32, i32
  }
  func.func @transform_10(%arg0: i32) -> (i32, i32) {
    %c0_i32 = arith.constant 0 : i32
    %c0_i32_0 = arith.constant 0 : i32
    %c0_i32_1 = arith.constant 0 : i32
    return %c0_i32, %c0_i32_0 : i32, i32
  }
  func.func @transform_11(%arg0: i32) -> (i32, i32) {
    %c0_i32 = arith.constant 0 : i32
    %c0_i32_0 = arith.constant 0 : i32
    %c0_i32_1 = arith.constant 0 : i32
    return %c0_i32, %c0_i32_0 : i32, i32
  }
  func.func @transform_12(%arg0: i32) -> (i32, i32) {
    %c0_i32 = arith.constant 0 : i32
    %c0_i32_0 = arith.constant 0 : i32
    %c0_i32_1 = arith.constant 0 : i32
    return %c0_i32, %c0_i32_0 : i32, i32
  }
  func.func @transform_13(%arg0: i32) -> (i32, i32) {
    %c0_i32 = arith.constant 0 : i32
    %c0_i32_0 = arith.constant 0 : i32
    %c0_i32_1 = arith.constant 0 : i32
    return %c0_i32, %c0_i32_0 : i32, i32
  }
  func.func @transform_14(%arg0: i32) -> (i32, i32) {
    %c0_i32 = arith.constant 0 : i32
    %c0_i32_0 = arith.constant 0 : i32
    %c0_i32_1 = arith.constant 0 : i32
    return %c0_i32, %c0_i32_0 : i32, i32
  }
  func.func @transform_15(%arg0: i32) -> (i32, i32) {
    %c0_i32 = arith.constant 0 : i32
    %c0_i32_0 = arith.constant 0 : i32
    %c0_i32_1 = arith.constant 0 : i32
    return %c0_i32, %c0_i32_0 : i32, i32
  }
  func.func @transform_16(%arg0: i32) -> (i32, i32) {
    %c0_i32 = arith.constant 0 : i32
    %c0_i32_0 = arith.constant 0 : i32
    %c0_i32_1 = arith.constant 0 : i32
    return %c0_i32, %c0_i32_0 : i32, i32
  }
  func.func @transform_17(%arg0: i32) -> (i32, i32) {
    %c0_i32 = arith.constant 0 : i32
    %c0_i32_0 = arith.constant 0 : i32
    %c0_i32_1 = arith.constant 0 : i32
    return %c0_i32, %c0_i32_0 : i32, i32
  }
  func.func @transform_18(%arg0: i32) -> (i32, i32) {
    %c0_i32 = arith.constant 0 : i32
    %c0_i32_0 = arith.constant 0 : i32
    %c0_i32_1 = arith.constant 0 : i32
    return %c0_i32, %c0_i32_0 : i32, i32
  }
  func.func @transform_19(%arg0: i32) -> (i32, i32) {
    %c0_i32 = arith.constant 0 : i32
    %c0_i32_0 = arith.constant 0 : i32
    %c0_i32_1 = arith.constant 0 : i32
    return %c0_i32, %c0_i32_0 : i32, i32
  }
  func.func @transform_20(%arg0: i32) -> (i32, i32) {
    %c0_i32 = arith.constant 0 : i32
    %c0_i32_0 = arith.constant 0 : i32
    %c0_i32_1 = arith.constant 0 : i32
    return %c0_i32, %c0_i32_0 : i32, i32
  }
  func.func @transform_21(%arg0: i32) -> (i32, i32) {
    %c0_i32 = arith.constant 0 : i32
    %c0_i32_0 = arith.constant 0 : i32
    %c0_i32_1 = arith.constant 0 : i32
    return %c0_i32, %c0_i32_0 : i32, i32
  }
  func.func @transform_22(%arg0: i32) -> (i32, i32) {
    %c0_i32 = arith.constant 0 : i32
    %c0_i32_0 = arith.constant 0 : i32
    %c0_i32_1 = arith.constant 0 : i32
    return %c0_i32, %c0_i32_0 : i32, i32
  }
  func.func @transform_23(%arg0: i32) -> (i32, i32) {
    %c0_i32 = arith.constant 0 : i32
    %c0_i32_0 = arith.constant 0 : i32
    %c0_i32_1 = arith.constant 0 : i32
    return %c0_i32, %c0_i32_0 : i32, i32
  }
  func.func @transform_24(%arg0: i32) -> (i32, i32) {
    %c0_i32 = arith.constant 0 : i32
    %c0_i32_0 = arith.constant 0 : i32
    %c0_i32_1 = arith.constant 0 : i32
    return %c0_i32, %c0_i32_0 : i32, i32
  }
  func.func @transform_25(%arg0: i32) -> (i32, i32) {
    %c0_i32 = arith.constant 0 : i32
    %c0_i32_0 = arith.constant 0 : i32
    %c0_i32_1 = arith.constant 0 : i32
    return %c0_i32, %c0_i32_0 : i32, i32
  }
  func.func @transform_26(%arg0: i32) -> (i32, i32) {
    %c0_i32 = arith.constant 0 : i32
    %c0_i32_0 = arith.constant 0 : i32
    %c0_i32_1 = arith.constant 0 : i32
    return %c0_i32, %c0_i32_0 : i32, i32
  }
  func.func @transform_27(%arg0: i32) -> (i32, i32) {
    %c0_i32 = arith.constant 0 : i32
    %c0_i32_0 = arith.constant 0 : i32
    %c0_i32_1 = arith.constant 0 : i32
    return %c0_i32, %c0_i32_0 : i32, i32
  }
  func.func @transform_28(%arg0: i32) -> (i32, i32) {
    %c0_i32 = arith.constant 0 : i32
    %c0_i32_0 = arith.constant 0 : i32
    %c0_i32_1 = arith.constant 0 : i32
    return %c0_i32, %c0_i32_0 : i32, i32
  }
  func.func @transform_29(%arg0: i32) -> (i32, i32) {
    %c0_i32 = arith.constant 0 : i32
    %c0_i32_0 = arith.constant 0 : i32
    %c0_i32_1 = arith.constant 0 : i32
    return %c0_i32, %c0_i32_0 : i32, i32
  }
  func.func @transform_30(%arg0: i32) -> (i32, i32) {
    %c0_i32 = arith.constant 0 : i32
    %c0_i32_0 = arith.constant 0 : i32
    %c0_i32_1 = arith.constant 0 : i32
    return %c0_i32, %c0_i32_0 : i32, i32
  }
  func.func @transform_31(%arg0: i32) -> (i32, i32) {
    %c0_i32 = arith.constant 0 : i32
    %c0_i32_0 = arith.constant 0 : i32
    %c0_i32_1 = arith.constant 0 : i32
    return %c0_i32, %c0_i32_0 : i32, i32
  }
  func.func @transform_32(%arg0: i32) -> (i32, i32) {
    %c0_i32 = arith.constant 0 : i32
    %c0_i32_0 = arith.constant 0 : i32
    %c0_i32_1 = arith.constant 0 : i32
    return %c0_i32, %c0_i32_0 : i32, i32
  }
  func.func @transform_33(%arg0: i32) -> (i32, i32) {
    %c0_i32 = arith.constant 0 : i32
    %c0_i32_0 = arith.constant 0 : i32
    %c0_i32_1 = arith.constant 0 : i32
    return %c0_i32, %c0_i32_0 : i32, i32
  }
  func.func @transform_34(%arg0: i32) -> (i32, i32) {
    %c0_i32 = arith.constant 0 : i32
    %c0_i32_0 = arith.constant 0 : i32
    %c0_i32_1 = arith.constant 0 : i32
    return %c0_i32, %c0_i32_0 : i32, i32
  }
  func.func @transform_35(%arg0: i32) -> (i32, i32) {
    %c0_i32 = arith.constant 0 : i32
    %c0_i32_0 = arith.constant 0 : i32
    %c0_i32_1 = arith.constant 0 : i32
    return %c0_i32, %c0_i32_0 : i32, i32
  }
  func.func @transform_36(%arg0: i32) -> (i32, i32) {
    %c0_i32 = arith.constant 0 : i32
    %c0_i32_0 = arith.constant 0 : i32
    %c0_i32_1 = arith.constant 0 : i32
    return %c0_i32, %c0_i32_0 : i32, i32
  }
  func.func @transform_37(%arg0: i32) -> (i32, i32, i32) {
    %c0_i32 = arith.constant 0 : i32
    %c0_i32_0 = arith.constant 0 : i32
    %c0_i32_1 = arith.constant 0 : i32
    return %arg0, %c0_i32, %c0_i32_0 : i32, i32, i32
  }
}

</mosaic_0001>

<bundles_post_ra>
// kernel: tpu_custom_call.1
= control target key start
LH: loop header
LB: loop body
LE: loop exit
PB: predicated region body
PF: predicated region fallthrough
CT: control target
= control target key end

     0   :  { %s3215_s6 = smov 1   ;;  %s3216_s10 = smov 2   ;;  %s3939_s0 = inlined_call_operand.smem [shape: u32[38], index: -1, kind: input, shape index: {}] }
   0x1   :  { %s3268_s5 = sld [smem:[%s3939_s0]]   ;;  %s3217_s14 = smov 3  }
   0x2   :  { %s3273_s9 = sld [smem:[%s3939_s0 + %s3215_s6]]   ;;  %s3218_s18 = smov 4  }
   0x3   :  { %s3278_s13 = sld [smem:[%s3939_s0 + %s3216_s10]]   ;;  %s3219_s22 = smov 5  }
   0x4   :  { %s3283_s17 = sld [smem:[%s3939_s0 + %s3217_s14]]   ;;  %s3220_s26 = smov 6  }
   0x5   :  { %s3288_s21 = sld [smem:[%s3939_s0 + %s3218_s18]]   ;;  %s3221_s30 = smov 7  }
   0x6   :  { %s3293_s25 = sld [smem:[%s3939_s0 + %s3219_s22]]   ;;  %s3222_s4 = smov 8  }
   0x7   :  { %s3298_s29 = sld [smem:[%s3939_s0 + %s3220_s26]]   ;;  %s3223_s10 = smov 9  }
   0x8   :  { %3947 = sst [smem:[#allocation5_spill]] %s3273_s9  ;;  %s3224_s15 = smov 10  }
   0x9   :  { %s3303_s3 = sld [smem:[%s3939_s0 + %s3221_s30]]   ;;  %s3225_s20 = smov 11  }
   0xa   :  { %s3308_s8 = sld [smem:[%s3939_s0 + %s3222_s4]]   ;;  %s3226_s26 = smov 12  }
   0xb   :  { %s3313_s14 = sld [smem:[%s3939_s0 + %s3223_s10]]   ;;  %s3227_s1 = smov 13  }
   0xc   :  { %s3318_s19 = sld [smem:[%s3939_s0 + %s3224_s15]]   ;;  %s3228_s7 = smov 14  }
   0xd   :  { %s3323_s24 = sld [smem:[%s3939_s0 + %s3225_s20]]   ;;  %s3229_s15 = smov 15  }
   0xe   :  { %s3328_s30 = sld [smem:[%s3939_s0 + %s3226_s26]]   ;;  %s3230_s22 = smov 16  }
   0xf   :  { %s3333_s6 = sld [smem:[%s3939_s0 + %s3227_s1]]   ;;  %s3231_s28 = smov 17  }
  0x10   :  { %s3338_s12 = sld [smem:[%s3939_s0 + %s3228_s7]]   ;;  %s3232_s7 = smov 18  }
  0x11   :  { %s3343_s20 = sld [smem:[%s3939_s0 + %s3229_s15]]   ;;  %s3233_s15 = smov 19  }
  0x12   :  { %s3348_s27 = sld [smem:[%s3939_s0 + %s3230_s22]]   ;;  %s3234_s22 = smov 20  }
  0x13   :  { %s3353_s4 = sld [smem:[%s3939_s0 + %s3231_s28]]   ;;  %s3235_s28 = smov 21  }
  0x14   :  { %s3358_s9 = sld [smem:[%s3939_s0 + %s3232_s7]]   ;;  %s3236_s7 = smov 22  }
  0x16   :  { %3948 = sst [smem:[#allocation6_spill]] %s3338_s12 }
  0x17   :  { %3949 = sst [smem:[#allocation7_spill]] %s3343_s20 }
  0x18   :  { %s3363_s20 = sld [smem:[%s3939_s0 + %s3233_s15]]   ;;  %s3237_s15 = smov 23  }
  0x19   :  { %3950 = sst [smem:[#allocation8_spill]] %s3353_s4 }
  0x1a   :  { %3951 = sst [smem:[#allocation9_spill]] %s3358_s9 }
  0x1b   :  { %s3368_s12 = sld [smem:[%s3939_s0 + %s3234_s22]]   ;;  %s3238_s22 = smov 24  }
  0x1c   :  { %s3373_s4 = sld [smem:[%s3939_s0 + %s3235_s28]]   ;;  %s3239_s28 = smov 25  }
  0x1d   :  { %s3378_s9 = sld [smem:[%s3939_s0 + %s3236_s7]]   ;;  %s3240_s7 = smov 26  }
  0x1e   :  { %3952 = sst [smem:[#allocation10_spill]] %s3363_s20 }
  0x1f   :  { %s3383_s20 = sld [smem:[%s3939_s0 + %s3237_s15]]   ;;  %s3241_s15 = smov 27  }
  0x21   :  { %3953 = sst [smem:[#allocation11_spill]] %s3368_s12 }
  0x22   :  { %3954 = sst [smem:[#allocation12_spill]] %s3373_s4 }
  0x23   :  { %3955 = sst [smem:[#allocation13_spill]] %s3378_s9 }
  0x24   :  { %s3388_s12 = sld [smem:[%s3939_s0 + %s3238_s22]]   ;;  %s3242_s22 = smov 28  }
  0x25   :  { %3956 = sst [smem:[#allocation14_spill]] %s3383_s20 }
  0x26   :  { %s3393_s4 = sld [smem:[%s3939_s0 + %s3239_s28]]   ;;  %s3243_s28 = smov 29  }
  0x27   :  { %s3398_s9 = sld [smem:[%s3939_s0 + %s3240_s7]]   ;;  %s3244_s7 = smov 30  }
  0x28   :  { %s3403_s20 = sld [smem:[%s3939_s0 + %s3241_s15]]   ;;  %s3245_s15 = smov 31  }
  0x2a   :  { %3957 = sst [smem:[#allocation15_spill]] %s3388_s12 }
  0x2b   :  { %s3408_s12 = sld [smem:[%s3939_s0 + %s3242_s22]]   ;;  %s3246_s22 = smov 32  }
  0x2c   :  { %3958 = sst [smem:[#allocation16_spill]] %s3393_s4 }
  0x2d   :  { %3959 = sst [smem:[#allocation17_spill]] %s3398_s9 }
  0x2e   :  { %3960 = sst [smem:[#allocation18_spill]] %s3403_s20 }
  0x2f   :  { %s3413_s4 = sld [smem:[%s3939_s0 + %s3243_s28]]   ;;  %s3247_s28 = smov 33  }
  0x30   :  { %s3418_s9 = sld [smem:[%s3939_s0 + %s3244_s7]]   ;;  %s3248_s7 = smov 34  }
  0x31   :  { %3961 = sst [smem:[#allocation19_spill]] %s3408_s12 }
  0x32   :  { %s3423_s20 = sld [smem:[%s3939_s0 + %s3245_s15]]   ;;  %s3249_s15 = smov 35  }
  0x33   :  { %s3428_s12 = sld [smem:[%s3939_s0 + %s3246_s22]]   ;;  %s3250_s22 = smov 36  }
  0x35   :  { %3962 = sst [smem:[#allocation20_spill]] %s3413_s4 }
  0x36   :  { %3963 = sst [smem:[#allocation21_spill]] %s3418_s9 }
  0x37   :  { %s3433_s4 = sld [smem:[%s3939_s0 + %s3247_s28]]   ;;  %s3251_s28 = smov 37  }
  0x38   :  { %3964 = sst [smem:[#allocation22_spill]] %s3423_s20 }
  0x39   :  { %3965 = sst [smem:[#allocation23_spill]] %s3428_s12 }
  0x3a   :  { %s3438_s9 = sld [smem:[%s3939_s0 + %s3248_s7]]  }
  0x3b   :  { %s3443_s20 = sld [smem:[%s3939_s0 + %s3249_s15]]  }
  0x3c   :  { %s3448_s12 = sld [smem:[%s3939_s0 + %s3250_s22]]  }
  0x3d   :  { %3966 = sst [smem:[#allocation24_spill]] %s3433_s4 }
  0x3e   :  { %s3453_s4 = sld [smem:[%s3939_s0 + %s3251_s28]]  }
  0x3f   :  { %v3456_v0 = vld [vmem:[%s3268_s5] sm:$0xff]  ;;  %v3459_v1 = vld [vmem:[%s3268_s5 + $0x8] sm:$0xff]  ;;  %vm223_vm0 = vsmask.f32 7424  ;;  %v3464_v3 = vld [vmem:[%s3268_s5 + $0x10] sm:$0xff]  ;;  %vm222_vm1 = vcmask 1047552  }
  0x40   :  { %v193_v2 = vpack.c.bf16 %v3459_v1, %v3456_v0  ;;  %v3467_v4 = vld [vmem:[%s3268_s5 + $0x18] sm:$0xff]  ;;  %v3093_v6 = vld [vmem:[%s3278_s13] sm:$0xff]   ;;  %s3252_s0 = smov 32   ;;  %v3094_v11 = vld [vmem:[%s3278_s13 + $0x8] sm:$0xff]   ;;  %s3253_s5 = smov 64  }
  0x41   :  { %v194_v5 = vpack.c.bf16 %v3467_v4, %v3464_v3  ;;  %2884 = vmatprep.subr.bf16.mxu0 %v3093_v6  ;;  %vm3475_vm2 = vmand %vm222_vm1, %vm223_vm0  ;;  %v3095_v17 = vld [vmem:[%s3278_s13 + $0x10] sm:$0xff]   ;;  %v3096_v24 = vld [vmem:[%s3278_s13 + $0x18] sm:$0xff]  }
  0x42   :  { %229 = vrot.lane.b32.xlu0 %v193_v2, %s3252_s0  ;;  %v196_v7 = vshrl.u32 %v193_v2, 16  ;;  %v199_v8 = vshll.u32 %v193_v2, 16  ;;  %2885 = vmatpush3.bf16.msra.mxu0 %v3093_v6  ;;  %v3097_v25 = vld [vmem:[%s3278_s13 + $0x20] sm:$0xff]   ;;  %v3098_v26 = vld [vmem:[%s3278_s13 + $0x28] sm:$0xff]  }
  0x43   :  { %v203_v9 = vshrl.u32 %v194_v5, 16  ;;  %v206_v10 = vshll.u32 %v194_v5, 16  ;;  %2886 = vmatprep.subr.bf16.mxu0 %v3094_v11 }
  0x44   :  { %v216_v12 = vrot.slane %v199_v8, 1  ;;  %v198_v13 = vrot.slane %v196_v7, 7 }
  0x45   :  { %v205_v15 = vrot.slane %v203_v9, 7  ;;  %v218_v16 = vrot.slane %v206_v10, 1 }
  0x46   :  { %v217_v18 = vor.u32 %v216_v12, %v196_v7  ;;  %231 = vrot.lane.b32.xlu0 %v194_v5, %s3252_s0  ;;  %v201_v19 = vor.u32 %v199_v8, %v198_v13  ;;  %2887 = vmatpush3.bf16.msra.mxu0 %v3094_v11 }
  0x47   :  { %v219_v20 = vor.u32 %v218_v16, %v203_v9  ;;  %v208_v21 = vor.u32 %v206_v10, %v205_v15  ;;  %2888 = vmatprep.subr.bf16.mxu0 %v3095_v17 }
  0x48   :  { %v225_v22 = vsel %vm3475_vm2, %v217_v18, 0 }
  0x49   :  { %235 = vrot.lane.b32.xlu1 %v225_v22, %s3253_s5  ;;  %v226_v23 = vsel %vm3475_vm2, %v219_v20, 0 }
  0x4a   :  { %2889 = vmatpush3.bf16.msra.mxu0 %v3095_v17 }
  0x4b   :  { %2890 = vmatprep.subr.bf16.mxu0 %v3096_v24 }
  0x4d   :  { %237 = vrot.lane.b32.xlu1 %v226_v23, %s3253_s5 }
  0x4e   :  { %2891 = vmatpush3.bf16.msra.mxu0 %v3096_v24 }
  0x4f   :  { %2892 = vmatprep.subr.bf16.mxu0 %v3097_v25 }
  0x52   :  { %2893 = vmatpush3.bf16.msra.mxu0 %v3097_v25 }
  0x53   :  { %2894 = vmatprep.subr.bf16.mxu0 %v3098_v26 }
  0x56   :  { %2895 = vmatpush3.bf16.msra.mxu0 %v3098_v26 }
  0x57   :  { %80 = vsyncpa [#allocation3], 0  ;;  %vm211_vm3 = vcmask 1040384   ;;  %vm212_vm4 = vsmask.f32 256  ;;  %vm239_vm6 = vcmask 261120  }
  0x58   :  { %vm3491_vm5 = vmand %vm211_vm3, %vm212_vm4  ;;  %vm246_vm7 = vcmask 523264   ;;  %vm287_vm8 = vcmask 785408   ;;  %v3099_v38 = vld [vmem:[%s3293_s25] sm:$0xff]   ;;  %v3100_v39 = vld [vmem:[%s3293_s25 + $0x8] sm:$0xff]   ;;  %vm3255_vm9 = vmmov 0   ;;  %vm551_vm10 = vcmask 1041409  }
  0x59   :  { %v214_v29 = vsel %vm3491_vm5, 0, %v201_v19  ;;  %v215_v31 = vsel %vm3491_vm5, 0, %v208_v21  ;;  %2900 = vmatprep.subr.bf16.mxu1 %v3099_v38  ;;  %v3101_v40 = vld [vmem:[%s3293_s25 + $0x10] sm:$0xff]   ;;  %v3102_v41 = vld [vmem:[%s3293_s25 + $0x18] sm:$0xff]   ;;  %v2677_v42 = vld [vmem:[%s3283_s17] ss:$0 sm:$0xff] }
  0x5a   :  { %2901 = vmatpush3.bf16.msra.mxu1 %v3099_v38  ;;  %v3103_v43 = vld [vmem:[%s3293_s25 + $0x20] sm:$0xff]   ;;  %v3104_v44 = vld [vmem:[%s3293_s25 + $0x28] sm:$0xff]   ;;  %vm611_vm11 = vcmask 15360   ;;  %s3971_s13 = sld [smem:[#allocation6_spill]]  ;;  %s3972_s17 = sld [smem:[#allocation7_spill]]  ;;  %vm1315_vm12 = vcmask 130048  }
  0x5b   :  { %2902 = vmatprep.subr.bf16.mxu1 %v3100_v39  ;;  %v2678_v45 = vld [vmem:[%s3288_s21] ss:$0 sm:$0xff]  ;;  %s3973_s21 = sld [smem:[#allocation8_spill]]  ;;  %s3974_s25 = sld [smem:[#allocation5_spill]]  ;;  %vm1575_vm13 = vcmask 1043456   ;;  %vm1833_vm0 = vcmask 1041408  }
  0x5c   :  { %vm1576_vm14 = vsmask.f32 3328  ;;  %s3986_s7 = sld [smem:[#allocation20_spill]]  ;;  %vm1829_vm1 = vcmask 31744   ;;  %s3987_s10 = sld [smem:[#allocation18_spill]]  ;;  %v3173_v27 = vld [vmem:[%s3443_s20 + $0x10] sm:$0xff]  }
  0x5d   :  { %vm3760_vm15 = vmand %vm1575_vm13, %vm1576_vm14  ;;  %s3988_s11 = sld [smem:[#allocation19_spill]]  ;;  %s3989_s15 = sld [smem:[#allocation23_spill]] }
  0x5e   :  { %2903 = vmatpush3.bf16.msra.mxu1 %v3100_v39  ;;  %s3990_s16 = sld [smem:[#allocation21_spill]]  ;;  %s3991_s18 = sld [smem:[#allocation22_spill]] }
  0x5f   :  { %2904 = vmatprep.subr.bf16.mxu1 %v3101_v40  ;;  %s3992_s22 = sld [smem:[#allocation24_spill]] }
  0x62   :  { %2905 = vmatpush3.bf16.msra.mxu1 %v3101_v40 }
  0x63   :  { %2906 = vmatprep.subr.bf16.mxu1 %v3102_v41 }
  0x66   :  { %2907 = vmatpush3.bf16.msra.mxu1 %v3102_v41 }
  0x67   :  { %2908 = vmatprep.subr.bf16.mxu1 %v3103_v43 }
  0x6a   :  { %2909 = vmatpush3.bf16.msra.mxu1 %v3103_v43 }
  0x6b   :  { %2910 = vmatprep.subr.bf16.mxu1 %v3104_v44 }
  0x6e   :  { %2911 = vmatpush3.bf16.msra.mxu1 %v3104_v44 }
  0xb4   :  { %v230_v28 = vpop.permute.xlu0 %229 }
  0xb5   :  { %v242_v30 = vsel %vm239_vm6, %v214_v29, %v230_v28 }
  0xb8   :  { %v232_v32 = vpop.permute.xlu0 %231 }
  0xb9   :  { %v245_v35 = vsel %vm239_vm6, %v215_v31, %v232_v32  ;;  %v3254_v31 = vmov 0.0   ;;  %v3106_v32 = vld [vmem:[%s3308_s8 + $0x8] sm:$0xff]  }
  0xba   :  { %2916 = vmatprep.subr.bf16.mxu0 %v3254_v31  ;;  %2924 = vmatprep.subr.bf16.mxu1 %v3254_v31 }
  0xbb   :  { %v236_v33 = vpop.permute.xlu1 %235 }
  0xbc   :  { %v248_v34 = vsel %vm246_vm7, %v242_v30, %v236_v33  ;;  %v3105_v30 = vld [vmem:[%s3308_s8] sm:$0xff]   ;;  %s3977_s8 = sld [smem:[#allocation10_spill]] }
  0xbd   :  { %2896 = vmatprep.mubr.msk.bf16.mxu0 %vm287_vm8, %v248_v34  ;;  %v2687_v33 = vld [vmem:[%s3298_s29] ss:$0 sm:$0xff]  ;;  %s3975_s29 = sld [smem:[#allocation9_spill]] }
  0xbe   :  { %v2688_v34 = vld [vmem:[%s3303_s3] ss:$0 sm:$0xff]  ;;  %s3976_s3 = sld [smem:[#allocation12_spill]] }
  0xbf   :  { %v238_v36 = vpop.permute.xlu1 %237 }
  0xc0   :  { %v250_v37 = vsel %vm246_vm7, %v245_v35, %v238_v36 }
  0xc1   :  { %2897 = vmatmul.mubr.msk.bf16.vlgmr.msra.gmra.mrb[0].mxu0 %vm287_vm8, %v250_v37 }
  0xc2   :  { %2917 = vmatpush3.bf16.msra.mxu0 %v3105_v30  ;;  %2920 = vmatprep.mubr.msk.bf16.mxu0 %vm3255_vm9, %v3254_v31 }
  0xc3   :  { %2918 = vmatprep.subr.bf16.mxu0 %v3254_v31 }
  0xc6   :  { %2919 = vmatpush3.bf16.msra.mxu0 %v3106_v32 }
 0x194   :  { %v2898_v46 = vpop.f32.mrb[0].mxu0 }
 0x195   :  { %v349_v47 = vmul.f32 %v2898_v46, %v2677_v42  ;;  %v326_v48 = vpop.f32.mrb[1].mxu0 }
 0x196   :  { %v347_v49 = vmul.f32 %v2677_v42, %v326_v48  ;;  %v2899_v50 = vpop.f32.mrb[2].mxu0 }
 0x197   :  { %v359_v51 = vadd.f32 %v2678_v45, %v349_v47  ;;  %v350_v52 = vmul.f32 %v2899_v50, %v2677_v42  ;;  %v329_v53 = vpop.f32.mrb[3].mxu0 }
 0x198   :  { %v357_v54 = vadd.f32 %v2678_v45, %v347_v49  ;;  %v348_v55 = vmul.f32 %v2677_v42, %v329_v53 }
 0x199   :  { %v360_v56 = vadd.f32 %v2678_v45, %v350_v52  ;;  %v363_v58 = vmax.f32 %v359_v51, 0.0 }
 0x19a   :  { %v358_v57 = vadd.f32 %v2678_v45, %v348_v55  ;;  %v361_v60 = vmax.f32 %v357_v54, 0.0 }
 0x19b   :  { %v364_v59 = vmax.f32 %v360_v56, 0.0 }
 0x19c   :  { %v362_v61 = vmax.f32 %v358_v57, 0.0 }
 0x19d   :  { %v366_v62 = vpack.c.bf16 %v364_v59, %v363_v58 }
 0x19e   :  { %v365_v63 = vpack.c.bf16 %v362_v61, %v361_v60 }
 0x19f   :  { %397 = vrot.lane.b32.xlu1 %v366_v62, %s3252_s0  ;;  %v375_v2 = vshrl.u32 %v366_v62, 16  ;;  %v378_v5 = vshll.u32 %v366_v62, 16 }
 0x1a0   :  { %395 = vrot.lane.b32.xlu0 %v365_v63, %s3252_s0  ;;  %v368_v6 = vshrl.u32 %v365_v63, 16  ;;  %v371_v7 = vshll.u32 %v365_v63, 16 }
 0x1a1   :  { %v387_v8 = vrot.slane %v378_v5, 1  ;;  %v377_v9 = vrot.slane %v375_v2, 7 }
 0x1a2   :  { %v385_v10 = vrot.slane %v371_v7, 1  ;;  %v370_v11 = vrot.slane %v368_v6, 7 }
 0x1a3   :  { %v388_v12 = vor.u32 %v387_v8, %v375_v2  ;;  %v380_v13 = vor.u32 %v378_v5, %v377_v9 }
 0x1a4   :  { %v386_v15 = vor.u32 %v385_v10, %v368_v6  ;;  %v373_v16 = vor.u32 %v371_v7, %v370_v11 }
 0x1a5   :  { %v392_v17 = vsel %vm3475_vm2, %v388_v12, 0  ;;  %v384_v23 = vsel %vm3491_vm5, 0, %v380_v13  ;;  %v192_v13 = vld [vmem:[%s3313_s14] sm:$0x1]  ;;  %s3978_s14 = sld [smem:[#allocation11_spill]] }
 0x1a6   :  { %403 = vrot.lane.b32.xlu1 %v392_v17, %s3253_s5  ;;  %v391_v18 = vsel %vm3475_vm2, %v386_v15, 0  ;;  %v383_v21 = vsel %vm3491_vm5, 0, %v373_v16  ;;  %v617_v15 = vsel %vm211_vm3, %v192_v13, 0 }
 0x1a7   :  { %401 = vrot.lane.b32.xlu0 %v391_v18, %s3253_s5 }
 0x211   :  { %v398_v19 = vpop.permute.xlu1 %397 }
 0x212   :  { %v396_v20 = vpop.permute.xlu0 %395  ;;  %v410_v26 = vsel %vm239_vm6, %v384_v23, %v398_v19  ;;  %v3108_v23 = vld [vmem:[%s3318_s19 + $0x8] sm:$0xff]  }
 0x213   :  { %v407_v24 = vsel %vm239_vm6, %v383_v21, %v396_v20 }
 0x218   :  { %v404_v22 = vpop.permute.xlu1 %403 }
 0x219   :  { %v402_v25 = vpop.permute.xlu0 %401  ;;  %v414_v29 = vsel %vm246_vm7, %v410_v26, %v404_v22  ;;  %v3107_v22 = vld [vmem:[%s3318_s19] sm:$0xff]  }
 0x21a   :  { %v412_v28 = vsel %vm246_vm7, %v407_v24, %v402_v25  ;;  %2930 = vmatprep.subr.bf16.mxu0 %v3107_v22  ;;  %v3109_v24 = vld [vmem:[%s3318_s19 + $0x10] sm:$0xff]   ;;  %v3110_v25 = vld [vmem:[%s3318_s19 + $0x18] sm:$0xff]  }
 0x21b   :  { %2912 = vmatprep.mubr.msk.bf16.mxu1 %vm287_vm8, %v412_v28 }
 0x21c   :  { %2913 = vmatmul.mubr.msk.bf16.vlgmr.msra.gmra.mrb[0].mxu1 %vm287_vm8, %v414_v29 }
 0x21d   :  { %2926 = vmatprep.mubr.msk.bf16.mxu1 %vm3255_vm9, %v3254_v31  ;;  %2925 = vmatpush3.bf16.msra.mxu1 %v617_v15 }
 0x2ef   :  { %v2914_v35 = vpop.f32.mrb[0].mxu1 }
 0x2f0   :  { %v512_v36 = vmul.f32 %v2914_v35, %v2687_v33  ;;  %v489_v37 = vpop.f32.mrb[1].mxu1  ;;  %v3256_v35 = vmov 1966171168  }
 0x2f1   :  { %v510_v38 = vmul.f32 %v2687_v33, %v489_v37  ;;  %v2915_v39 = vpop.f32.mrb[2].mxu1  ;;  %v669_v37 = vlaneseq }
 0x2f2   :  { %v3542_v40 = vadd.f32 %v2688_v34, %v512_v36  ;;  %v513_v41 = vmul.f32 %v2915_v39, %v2687_v33  ;;  %v492_v42 = vpop.f32.mrb[3].mxu1  ;;  %v667_v36 = vunpack.c.l.s4 %v3256_v35  ;;  %v2703_v35 = vld [vmem:[%s3328_s30] ss:$0 sm:$0xff]  ;;  %s3983_s30 = sld [smem:[#allocation14_spill]] }
 0x2f3   :  { %v3544_v43 = vadd.f32 %v2688_v34, %v510_v38  ;;  %v511_v44 = vmul.f32 %v2687_v33, %v492_v42  ;;  %v670_v39 = vshrl.u32 %v669_v37, 7 }
 0x2f4   :  { %v3546_v45 = vadd.f32 %v2688_v34, %v513_v41  ;;  %v533_v47 = vsel %vm239_vm6, %v3542_v40, 0.0  ;;  %v668_v38 = vunpack.c.0.s8 %v667_v36 }
 0x2f5   :  { %v3548_v46 = vadd.f32 %v2688_v34, %v511_v44  ;;  %v524_v49 = vsel %vm239_vm6, %v3544_v43, 0.0 }
 0x2f6   :  { %v534_v48 = vsel %vm239_vm6, %v3546_v45, 0.0  ;;  %v3567_v41 = vsub.s32 %v668_v38, %v670_v39 }
 0x2f7   :  { %v535_v50 = vadd.f32 %v534_v48, %v533_v47  ;;  %v525_v51 = vsel %vm239_vm6, %v3548_v46, 0.0  ;;  %v3570_v47 = vsub.s32 0, %v670_v39  ;;  %v3111_v48 = vld [vmem:[%s3318_s19 + $0x20] sm:$0xff]  }
 0x2f8   :  { %v526_v52 = vadd.f32 %v525_v51, %v524_v49  ;;  %v3112_v51 = vld [vmem:[%s3318_s19 + $0x28] sm:$0xff]   ;;  %s3979_s19 = sld [smem:[#allocation15_spill]] }
 0x2f9   :  { %v536_v53 = vrot.slane %v535_v50, 4 }
 0x2fa   :  { %v527_v54 = vrot.slane %v526_v52, 4 }
 0x2fb   :  { %v537_v55 = vadd.f32 %v536_v53, %v535_v50 }
 0x2fc   :  { %v528_v56 = vadd.f32 %v527_v54, %v526_v52 }
 0x2fd   :  { %v538_v57 = vrot.slane %v537_v55, 2 }
 0x2fe   :  { %v529_v58 = vrot.slane %v528_v56, 2 }
 0x2ff   :  { %v539_v59 = vadd.f32 %v538_v57, %v537_v55 }
 0x300   :  { %v530_v60 = vadd.f32 %v529_v58, %v528_v56 }
 0x301   :  { %v540_v61 = vrot.slane %v539_v59, 1 }
 0x302   :  { %v531_v62 = vrot.slane %v530_v60, 1 }
 0x303   :  { %v541_v63 = vadd.f32 %v540_v61, %v539_v59 }
 0x304   :  { %v532_v2 = vadd.f32 %v531_v62, %v530_v60 }
 0x305   :  { %v544_v5 = vmul.f32 0.0625, %v541_v63 }
 0x306   :  { %v543_v6 = vmul.f32 0.0625, %v532_v2 }
 0x307   :  { %v546_v7 = vpack.c.bf16 %v544_v5, %v544_v5 }
 0x308   :  { %v545_v8 = vpack.c.bf16 %v543_v6, %v543_v6 }
 0x309   :  { %v550_v9 = vunpack.c.l.b16 %v546_v7 }
 0x30a   :  { %v549_v10 = vunpack.c.l.b16 %v545_v8 }
 0x30c   :  { %v552_v11 = vsel %vm551_vm10, %v550_v9, %v549_v10 }
 0x30d   :  { %v553_v12 = vpack.c.b16 %v552_v11, %v552_v11 }
 0x30f   :  { %2921 = vmatmul.mubr.msk.bf16.vlgmr.msra.gmra.mrb[4].mxu0 %vm239_vm6, %v553_v12 }
 0x310   :  { %2931 = vmatpush3.bf16.msra.mxu0 %v3107_v22 }
 0x311   :  { %2932 = vmatprep.subr.bf16.mxu0 %v3108_v23 }
 0x314   :  { %2933 = vmatpush3.bf16.msra.mxu0 %v3108_v23 }
 0x315   :  { %2934 = vmatprep.subr.bf16.mxu0 %v3109_v24 }
 0x318   :  { %2935 = vmatpush3.bf16.msra.mxu0 %v3109_v24 }
 0x319   :  { %2936 = vmatprep.subr.bf16.mxu0 %v3110_v25 }
 0x31c   :  { %2937 = vmatpush3.bf16.msra.mxu0 %v3110_v25 }
 0x31d   :  { %2938 = vmatprep.subr.bf16.mxu0 %v3111_v48 }
 0x320   :  { %2939 = vmatpush3.bf16.msra.mxu0 %v3111_v48 }
 0x321   :  { %2940 = vmatprep.subr.bf16.mxu0 %v3112_v51 }
 0x324   :  { %2941 = vmatpush3.bf16.msra.mxu0 %v3112_v51 }
 0x325   :  { %2962 = vmatprep.subr.bf16.mxu0 %v3254_v31 }
 0x3e2   :  { %v603_v16 = vpop.f32.mrb[4].mxu0 }
 0x3e3   :  { %v609_v17 = vmax.f32 %v603_v16, 0.0  ;;  %v2922_v18 = vpop.f32.mrb[5].mxu0 }
 0x3e4   :  { %v606_v19 = vpop.f32.mrb[6].mxu0 }
 0x3e5   :  { %v610_v20 = vpack.c.bf16 %v609_v17, %v609_v17  ;;  %v2923_v21 = vpop.f32.mrb[7].mxu0 }
 0x3e7   :  { %2927 = vmatmul.mubr.msk.bf16.vlgmr.msra.gmra.mrb[4].mxu1 %vm611_vm11, %v610_v20 }
 0x4ba   :  { %v653_v26 = vpop.f32.mrb[4].mxu1 }
 0x4bb   :  { %v2693_v28 = vmul.f32 -1.442695, %v653_v26  ;;  %v2928_v29 = vpop.f32.mrb[5].mxu1  ;;  %v3113_v26 = vld [vmem:[%s3333_s6] sm:$0xff]  }
 0x4bc   :  { %v656_v30 = vpop.f32.mrb[6].mxu1  ;;  %2946 = vmatprep.subr.bf16.mxu1 %v3113_v26  ;;  %v3115_v29 = vld [vmem:[%s3333_s6 + $0x10] sm:$0xff]  }
 0x4bd   :  { %3175 = vpow2.f32 %v2693_v28  ;;  %v2929_v32 = vpop.f32.mrb[7].mxu1  ;;  %v3114_v28 = vld [vmem:[%s3333_s6 + $0x8] sm:$0xff]   ;;  %2947 = vmatpush3.bf16.msra.mxu1 %v3113_v26  ;;  %v3116_v30 = vld [vmem:[%s3333_s6 + $0x18] sm:$0xff]   ;;  %v2712_v26 = vld [vmem:[%s3971_s13] ss:$0 sm:$0xff] }
 0x4be   :  { %2948 = vmatprep.subr.bf16.mxu1 %v3114_v28  ;;  %v2702_v32 = vld [vmem:[%s3323_s24] ss:$0 sm:$0xff]  ;;  %s3982_s24 = sld [smem:[#allocation13_spill]] }
 0x4c1   :  { %2949 = vmatpush3.bf16.msra.mxu1 %v3114_v28  ;;  %v2713_v28 = vld [vmem:[%s3972_s17] ss:$0 sm:$0xff] }
 0x4c2   :  { %2950 = vmatprep.subr.bf16.mxu1 %v3115_v29 }
 0x4c5   :  { %2951 = vmatpush3.bf16.msra.mxu1 %v3115_v29 }
 0x4c6   :  { %2952 = vmatprep.subr.bf16.mxu1 %v3116_v30 }
 0x4c7   :  { %v3176_v33 = vpop.eup %3175 }
 0x4c8   :  { %v662_v34 = vadd.f32 1.0, %v3176_v33  ;;  %v3117_v33 = vld [vmem:[%s3333_s6 + $0x20] sm:$0xff]  }
 0x4c9   :  { %2953 = vmatpush3.bf16.msra.mxu1 %v3116_v30 }
 0x4ca   :  { %3177 = vrcp.f32 %v662_v34  ;;  %v3118_v34 = vld [vmem:[%s3333_s6 + $0x28] sm:$0xff]   ;;  %2954 = vmatprep.subr.bf16.mxu1 %v3117_v33  ;;  %s3984_s6 = sld [smem:[#allocation16_spill]] }
 0x4cd   :  { %2955 = vmatpush3.bf16.msra.mxu1 %v3117_v33 }
 0x4ce   :  { %2956 = vmatprep.subr.bf16.mxu1 %v3118_v34 }
 0x4d1   :  { %2957 = vmatpush3.bf16.msra.mxu1 %v3118_v34 }
 0x4d2   :  { %2970 = vmatprep.subr.bf16.mxu1 %v3254_v31 }
 0x4d4   :  { %v3178_v42 = vpop.eup %3177 }
 0x4d5   :  { %v672_v44 = vrot.slane %v3178_v42, %v3567_v41 }
 0x4d7   :  { %v680_v49 = vrot.slane %v672_v44, %v3567_v41  ;;  %v673_v50 = vcombine.high %v672_v44, %v672_v44 }
 0x4d9   :  { %v691_v52 = vrot.slane %v680_v49, %v3570_v47  ;;  %v687_v53 = vrot.slane %v673_v50, %v3567_v41 }
 0x4db   :  { %v698_v54 = vmul.f32 %v691_v52, %v3544_v43  ;;  %v699_v55 = vmul.f32 %v691_v52, %v3548_v46  ;;  %v695_v56 = vrot.slane %v687_v53, %v3570_v47 }
 0x4dd   :  { %v3581_v57 = vadd.f32 %v698_v54, %v3456_v0  ;;  %v3584_v58 = vadd.f32 %v699_v55, %v3459_v1  ;;  %v700_v59 = vmul.f32 %v695_v56, %v3542_v40  ;;  %v701_v60 = vmul.f32 %v695_v56, %v3546_v45 }
 0x4df   :  { %v706_v61 = vmax.f32 %v3581_v57, 0.0  ;;  %v707_v43 = vmax.f32 %v3584_v58, 0.0  ;;  %v3592_v46 = vadd.f32 %v700_v59, %v3464_v3  ;;  %v3595_v0 = vadd.f32 %v701_v60, %v3467_v4 }
 0x4e1   :  { %v743_v1 = vpack.c.bf16 %v707_v43, %v706_v61  ;;  %v708_v40 = vmax.f32 %v3592_v46, 0.0  ;;  %v709_v45 = vmax.f32 %v3595_v0, 0.0  ;;  %v3123_v46 = vld [vmem:[%s3975_s29] sm:$0xff]   ;;  %v3124_v0 = vld [vmem:[%s3975_s29 + $0x8] sm:$0xff]  }
 0x4e3   :  { %773 = vrot.lane.b32.xlu0 %v743_v1, %s3252_s0  ;;  %v744_v3 = vpack.c.bf16 %v709_v45, %v708_v40  ;;  %v746_v62 = vshrl.u32 %v743_v1, 16  ;;  %v749_v63 = vshll.u32 %v743_v1, 16 }
 0x4e5   :  { %775 = vrot.lane.b32.xlu1 %v744_v3, %s3252_s0  ;;  %v763_v4 = vrot.slane %v749_v63, 1  ;;  %v748_v2 = vrot.slane %v746_v62, 7  ;;  %v753_v5 = vshrl.u32 %v744_v3, 16  ;;  %v756_v6 = vshll.u32 %v744_v3, 16 }
 0x4e7   :  { %v764_v7 = vor.u32 %v763_v4, %v746_v62  ;;  %v765_v8 = vrot.slane %v756_v6, 1  ;;  %v755_v9 = vrot.slane %v753_v5, 7  ;;  %v751_v10 = vor.u32 %v749_v63, %v748_v2 }
 0x4e9   :  { %v769_v11 = vsel %vm3475_vm2, %v764_v7, 0  ;;  %v766_v12 = vor.u32 %v765_v8, %v753_v5  ;;  %v758_v13 = vor.u32 %v756_v6, %v755_v9  ;;  %v761_v18 = vsel %vm3491_vm5, 0, %v751_v10 }
 0x4ea   :  { %779 = vrot.lane.b32.xlu0 %v769_v11, %s3253_s5 }
 0x4eb   :  { %v770_v15 = vsel %vm3475_vm2, %v766_v12, 0  ;;  %v762_v21 = vsel %vm3491_vm5, 0, %v758_v13 }
 0x4ec   :  { %781 = vrot.lane.b32.xlu1 %v770_v15, %s3253_s5 }
 0x555   :  { %v774_v16 = vpop.permute.xlu0 %773 }
 0x556   :  { %v785_v19 = vsel %vm239_vm6, %v761_v18, %v774_v16 }
 0x557   :  { %v776_v17 = vpop.permute.xlu1 %775 }
 0x558   :  { %v788_v23 = vsel %vm239_vm6, %v762_v21, %v776_v17 }
 0x55c   :  { %v780_v20 = vpop.permute.xlu0 %779 }
 0x55d   :  { %v790_v22 = vsel %vm246_vm7, %v785_v19, %v780_v20 }
 0x55e   :  { %2942 = vmatprep.mubr.msk.bf16.mxu0 %vm287_vm8, %v790_v22  ;;  %v782_v24 = vpop.permute.xlu1 %781 }
 0x55f   :  { %v792_v25 = vsel %vm246_vm7, %v788_v23, %v782_v24  ;;  %v3119_v24 = vld [vmem:[%s3348_s27] sm:$0xff]  }
 0x560   :  { %2943 = vmatmul.mubr.msk.bf16.vlgmr.msra.gmra.mrb[8].mxu0 %vm287_vm8, %v792_v25  ;;  %v3120_v25 = vld [vmem:[%s3348_s27 + $0x8] sm:$0xff]   ;;  %s3985_s27 = sld [smem:[#allocation17_spill]] }
 0x561   :  { %2966 = vmatprep.mubr.msk.bf16.mxu0 %vm3255_vm9, %v3254_v31  ;;  %2963 = vmatpush3.bf16.msra.mxu0 %v3119_v24 }
 0x562   :  { %2964 = vmatprep.subr.bf16.mxu0 %v3254_v31 }
 0x565   :  { %2965 = vmatpush3.bf16.msra.mxu0 %v3120_v25 }
 0x633   :  { %v2944_v36 = vpop.f32.mrb[8].mxu0 }
 0x634   :  { %v890_v37 = vmul.f32 %v2944_v36, %v2702_v32  ;;  %v867_v38 = vpop.f32.mrb[9].mxu0 }
 0x635   :  { %v888_v39 = vmul.f32 %v2702_v32, %v867_v38  ;;  %v2945_v42 = vpop.f32.mrb[10].mxu0 }
 0x636   :  { %v900_v44 = vadd.f32 %v2703_v35, %v890_v37  ;;  %v891_v48 = vmul.f32 %v2945_v42, %v2702_v32  ;;  %v870_v49 = vpop.f32.mrb[11].mxu0 }
 0x637   :  { %v898_v50 = vadd.f32 %v2703_v35, %v888_v39  ;;  %v889_v51 = vmul.f32 %v2702_v32, %v870_v49 }
 0x638   :  { %v901_v52 = vadd.f32 %v2703_v35, %v891_v48  ;;  %v904_v54 = vmax.f32 %v900_v44, 0.0 }
 0x639   :  { %v899_v53 = vadd.f32 %v2703_v35, %v889_v51  ;;  %v902_v56 = vmax.f32 %v898_v50, 0.0 }
 0x63a   :  { %v905_v55 = vmax.f32 %v901_v52, 0.0 }
 0x63b   :  { %v903_v59 = vmax.f32 %v899_v53, 0.0 }
 0x63c   :  { %v907_v60 = vpack.c.bf16 %v905_v55, %v904_v54 }
 0x63d   :  { %v906_v1 = vpack.c.bf16 %v903_v59, %v902_v56 }
 0x63e   :  { %938 = vrot.lane.b32.xlu1 %v907_v60, %s3252_s0  ;;  %v916_v3 = vshrl.u32 %v907_v60, 16  ;;  %v919_v62 = vshll.u32 %v907_v60, 16 }
 0x63f   :  { %936 = vrot.lane.b32.xlu0 %v906_v1, %s3252_s0  ;;  %v909_v63 = vshrl.u32 %v906_v1, 16  ;;  %v912_v4 = vshll.u32 %v906_v1, 16 }
 0x640   :  { %v928_v2 = vrot.slane %v919_v62, 1  ;;  %v918_v5 = vrot.slane %v916_v3, 7 }
 0x641   :  { %v926_v6 = vrot.slane %v912_v4, 1  ;;  %v911_v7 = vrot.slane %v909_v63, 7 }
 0x642   :  { %v929_v8 = vor.u32 %v928_v2, %v916_v3  ;;  %v921_v9 = vor.u32 %v919_v62, %v918_v5 }
 0x643   :  { %v927_v10 = vor.u32 %v926_v6, %v909_v63  ;;  %v914_v11 = vor.u32 %v912_v4, %v911_v7 }
 0x644   :  { %v933_v12 = vsel %vm3475_vm2, %v929_v8, 0  ;;  %v925_v19 = vsel %vm3491_vm5, 0, %v921_v9 }
 0x645   :  { %944 = vrot.lane.b32.xlu1 %v933_v12, %s3253_s5  ;;  %v932_v13 = vsel %vm3475_vm2, %v927_v10, 0  ;;  %v924_v17 = vsel %vm3491_vm5, 0, %v914_v11 }
 0x646   :  { %942 = vrot.lane.b32.xlu0 %v932_v13, %s3253_s5 }
 0x6b0   :  { %v939_v15 = vpop.permute.xlu1 %938 }
 0x6b1   :  { %v937_v16 = vpop.permute.xlu0 %936  ;;  %v951_v14 = vsel %vm239_vm6, %v925_v19, %v939_v15  ;;  %v742_v15 = vld [vmem:[%s3973_s21] sm:$0x1] }
 0x6b2   :  { %v948_v20 = vsel %vm239_vm6, %v924_v17, %v937_v16  ;;  %v1154_v16 = vsel %vm211_vm3, %v742_v15, 0 }
 0x6b7   :  { %v945_v18 = vpop.permute.xlu1 %944 }
 0x6b8   :  { %v943_v21 = vpop.permute.xlu0 %942  ;;  %v955_v23 = vsel %vm246_vm7, %v951_v14, %v945_v18 }
 0x6b9   :  { %v953_v22 = vsel %vm246_vm7, %v948_v20, %v943_v21 }
 0x6ba   :  { %2958 = vmatprep.mubr.msk.bf16.mxu1 %vm287_vm8, %v953_v22  ;;  %v3121_v22 = vld [vmem:[%s3974_s25] sm:$0xff]  }
 0x6bb   :  { %2959 = vmatmul.mubr.msk.bf16.vlgmr.msra.gmra.mrb[8].mxu1 %vm287_vm8, %v955_v23 }
 0x6bc   :  { %2972 = vmatprep.mubr.msk.bf16.mxu1 %vm3255_vm9, %v3254_v31  ;;  %2971 = vmatpush3.bf16.msra.mxu1 %v1154_v16 }
 0x78e   :  { %v2960_v29 = vpop.f32.mrb[8].mxu1 }
 0x78f   :  { %v1053_v30 = vmul.f32 %v2960_v29, %v2712_v26  ;;  %v1030_v32 = vpop.f32.mrb[9].mxu1 }
 0x790   :  { %v1051_v33 = vmul.f32 %v2712_v26, %v1030_v32  ;;  %v2961_v34 = vpop.f32.mrb[10].mxu1 }
 0x791   :  { %v3661_v35 = vadd.f32 %v2713_v28, %v1053_v30  ;;  %v1054_v36 = vmul.f32 %v2961_v34, %v2712_v26  ;;  %v1033_v37 = vpop.f32.mrb[11].mxu1 }
 0x792   :  { %v1061_v38 = vadd.f32 %v2713_v28, %v1051_v33  ;;  %v1052_v39 = vmul.f32 %v2712_v26, %v1033_v37 }
 0x793   :  { %v3663_v42 = vadd.f32 %v2713_v28, %v1054_v36  ;;  %v1074_v48 = vsel %vm239_vm6, %v3661_v35, 0.0 }
 0x794   :  { %v1062_v44 = vadd.f32 %v2713_v28, %v1052_v39  ;;  %v1065_v50 = vsel %vm239_vm6, %v1061_v38, 0.0 }
 0x795   :  { %v1075_v49 = vsel %vm239_vm6, %v3663_v42, 0.0 }
 0x796   :  { %v1076_v51 = vadd.f32 %v1075_v49, %v1074_v48  ;;  %v1066_v52 = vsel %vm239_vm6, %v1062_v44, 0.0 }
 0x797   :  { %v1067_v53 = vadd.f32 %v1066_v52, %v1065_v50 }
 0x798   :  { %v1077_v54 = vrot.slane %v1076_v51, 4 }
 0x799   :  { %v1068_v55 = vrot.slane %v1067_v53, 4 }
 0x79a   :  { %v1078_v56 = vadd.f32 %v1077_v54, %v1076_v51 }
 0x79b   :  { %v1069_v59 = vadd.f32 %v1068_v55, %v1067_v53 }
 0x79c   :  { %v1079_v60 = vrot.slane %v1078_v56, 2 }
 0x79d   :  { %v1070_v1 = vrot.slane %v1069_v59, 2 }
 0x79e   :  { %v1080_v3 = vadd.f32 %v1079_v60, %v1078_v56 }
 0x79f   :  { %v1071_v62 = vadd.f32 %v1070_v1, %v1069_v59 }
 0x7a0   :  { %v1081_v63 = vrot.slane %v1080_v3, 1 }
 0x7a1   :  { %v1072_v4 = vrot.slane %v1071_v62, 1 }
 0x7a2   :  { %v1082_v2 = vadd.f32 %v1081_v63, %v1080_v3 }
 0x7a3   :  { %v1073_v5 = vadd.f32 %v1072_v4, %v1071_v62 }
 0x7a4   :  { %v1084_v6 = vmul.f32 0.0625, %v1082_v2 }
 0x7a5   :  { %v1083_v7 = vmul.f32 0.0625, %v1073_v5 }
 0x7a6   :  { %v1086_v8 = vpack.c.bf16 %v1084_v6, %v1084_v6 }
 0x7a7   :  { %v1085_v9 = vpack.c.bf16 %v1083_v7, %v1083_v7 }
 0x7a8   :  { %v1090_v10 = vunpack.c.l.b16 %v1086_v8 }
 0x7a9   :  { %v1089_v11 = vunpack.c.l.b16 %v1085_v9 }
 0x7ab   :  { %v1091_v12 = vsel %vm551_vm10, %v1090_v10, %v1089_v11 }
 0x7ac   :  { %v1092_v13 = vpack.c.b16 %v1091_v12, %v1091_v12 }
 0x7ae   :  { %2967 = vmatmul.mubr.msk.bf16.vlgmr.msra.gmra.mrb[12].mxu0 %vm239_vm6, %v1092_v13 }
 0x7af   :  { %2978 = vmatprep.mubr.msk.bf16.mxu0 %vm1315_vm12, %v3121_v22 }
 0x881   :  { %v1142_v17 = vpop.f32.mrb[12].mxu0 }
 0x882   :  { %v1148_v18 = vmax.f32 %v1142_v17, 0.0  ;;  %v2968_v19 = vpop.f32.mrb[13].mxu0 }
 0x883   :  { %v1145_v20 = vpop.f32.mrb[14].mxu0 }
 0x884   :  { %v1149_v21 = vpack.c.bf16 %v1148_v18, %v1148_v18  ;;  %v2969_v14 = vpop.f32.mrb[15].mxu0 }
 0x886   :  { %2973 = vmatmul.mubr.msk.bf16.vlgmr.msra.gmra.mrb[12].mxu1 %vm611_vm11, %v1149_v21 }
 0x887   :  { %2984 = vmatprep.mubr.msk.bf16.mxu1 %vm1315_vm12, %v3121_v22  ;;  %v3129_v22 = vld [vmem:[%s3976_s3] sm:$0xff]  }
 0x959   :  { %v1190_v23 = vpop.f32.mrb[12].mxu1 }
 0x95a   :  { %v2718_v24 = vmul.f32 -1.442695, %v1190_v23  ;;  %v2974_v25 = vpop.f32.mrb[13].mxu1  ;;  %v3257_v23 = vmov 0  }
 0x95b   :  { %v1193_v26 = vpop.f32.mrb[14].mxu1  ;;  %v3131_v25 = vld [vmem:[%s3976_s3 + $0x10] sm:$0xff]  }
 0x95c   :  { %3179 = vpow2.f32 %v2718_v24  ;;  %v2975_v28 = vpop.f32.mrb[15].mxu1  ;;  %v3130_v24 = vld [vmem:[%s3976_s3 + $0x8] sm:$0xff]   ;;  %v3132_v26 = vld [vmem:[%s3976_s3 + $0x18] sm:$0xff]  }
 0x95d   :  { %v3133_v28 = vld [vmem:[%s3976_s3 + $0x20] sm:$0xff]  }
 0x966   :  { %v3180_v29 = vpop.eup %3179 }
 0x967   :  { %v1199_v30 = vadd.f32 1.0, %v3180_v29  ;;  %v3134_v29 = vld [vmem:[%s3976_s3 + $0x28] sm:$0xff]  }
 0x969   :  { %3181 = vrcp.f32 %v1199_v30  ;;  %v3135_v30 = vld [vmem:[%s3976_s3 + $0x30] sm:$0xff]  }
 0x973   :  { %v3182_v32 = vpop.eup %3181 }
 0x974   :  { %v1209_v33 = vrot.slane %v3182_v32, %v3567_v41  ;;  %v3136_v32 = vld [vmem:[%s3976_s3 + $0x38] sm:$0xff]  }
 0x976   :  { %v1217_v34 = vrot.slane %v1209_v33, %v3567_v41  ;;  %v1210_v36 = vcombine.high %v1209_v33, %v1209_v33  ;;  %v3137_v33 = vld [vmem:[%s3976_s3 + $0x40] sm:$0xff]  }
 0x978   :  { %v1228_v37 = vrot.slane %v1217_v34, %v3570_v47  ;;  %v1224_v39 = vrot.slane %v1210_v36, %v3567_v41  ;;  %v3138_v34 = vld [vmem:[%s3976_s3 + $0x48] sm:$0xff]   ;;  %v3139_v36 = vld [vmem:[%s3976_s3 + $0x50] sm:$0xff]  }
 0x97a   :  { %v1235_v48 = vmul.f32 %v1228_v37, %v1061_v38  ;;  %v1236_v49 = vmul.f32 %v1228_v37, %v1062_v44  ;;  %v1232_v50 = vrot.slane %v1224_v39, %v3570_v47  ;;  %v3140_v37 = vld [vmem:[%s3976_s3 + $0x58] sm:$0xff]   ;;  %v2733_v39 = vld [vmem:[%s3977_s8] ss:$0 sm:$0xff] }
 0x97c   :  { %v1239_v51 = vadd.f32 %v1235_v48, %v706_v61  ;;  %v1240_v52 = vadd.f32 %v1236_v49, %v707_v43  ;;  %v1237_v53 = vmul.f32 %v1232_v50, %v3661_v35  ;;  %v1238_v54 = vmul.f32 %v1232_v50, %v3663_v42  ;;  %v3122_v43 = vld [vmem:[%s3974_s25 + $0x8] ss:$0 sps:$4 sm:$0xff]   ;;  %v3127_v35 = vld [vmem:[%s3975_s29 + $0x20] sm:$0xff]  }
 0x97d   :  { %v3128_v42 = vld [vmem:[%s3975_s29 + $0x28] sm:$0xff]   ;;  %v2734_v48 = vld [vmem:[%s3978_s14] ss:$0 sm:$0xff] }
 0x97e   :  { %v1243_v55 = vmax.f32 %v1239_v51, 0.0  ;;  %v1244_v56 = vmax.f32 %v1240_v52, 0.0  ;;  %v1241_v38 = vadd.f32 %v1237_v53, %v708_v40  ;;  %v1242_v44 = vadd.f32 %v1238_v54, %v709_v45  ;;  %v3125_v40 = vld [vmem:[%s3975_s29 + $0x10] sm:$0xff]   ;;  %v3126_v45 = vld [vmem:[%s3975_s29 + $0x18] sm:$0xff]  }
 0x980   :  { %v1305_v59 = vpack.c.bf16 %v1244_v56, %v1243_v55  ;;  %v1245_v57 = vmax.f32 %v1241_v38, 0.0  ;;  %v1246_v61 = vmax.f32 %v1242_v44, 0.0 }
 0x982   :  { %2976 = vmatprep.subr.bf16.mxu0 %v1305_v59  ;;  %v1306_v58 = vpack.c.bf16 %v1246_v61, %v1245_v57 }
 0x983   :  { %2977 = vmatpush3.bf16.msra.mxu0 %v1305_v59 }
 0x984   :  { %2982 = vmatprep.subr.bf16.mxu1 %v1306_v58  ;;  %2988 = vmatprep.subr.bf16.mxu0 %v3254_v31 }
 0x985   :  { %2983 = vmatpush3.bf16.msra.mxu1 %v1306_v58 }
 0x986   :  { %2979 = vmatmul.mubr.msk.bf16.vlgmr.msra.gmra.mrb[16].mxu0 %vm1315_vm12, %v3122_v43  ;;  %1678 = vmatprep.subr.bf16.mxu1 %v3257_v23 }
 0x987   :  { %3000 = vmatprep.mubr.msk.bf16.mxu0 %vm3255_vm9, %v3254_v31  ;;  %2989 = vmatpush3.bf16.msra.mxu0 %v3123_v46 }
 0x988   :  { %2985 = vmatmul.mubr.msk.bf16.vlgmr.msra.gmra.mrb[16].mxu1 %vm1315_vm12, %v3122_v43  ;;  %2990 = vmatprep.subr.bf16.mxu0 %v3254_v31 }
 0x989   :  { %1679 = vmatpush1.bf16.msra.mxu1 %v3129_v22 }
 0x98a   :  { %1680 = vmatprep.subr.bf16.mxu1 %v3257_v23 }
 0x98b   :  { %2991 = vmatpush3.bf16.msra.mxu0 %v3124_v0 }
 0x98c   :  { %2992 = vmatprep.subr.bf16.mxu0 %v3254_v31 }
 0x98d   :  { %1681 = vmatpush1.bf16.msra.mxu1 %v3130_v24 }
 0x98e   :  { %1682 = vmatprep.subr.bf16.mxu1 %v3257_v23 }
 0x98f   :  { %2993 = vmatpush3.bf16.msra.mxu0 %v3125_v40 }
 0x990   :  { %2994 = vmatprep.subr.bf16.mxu0 %v3254_v31 }
 0x991   :  { %1683 = vmatpush1.bf16.msra.mxu1 %v3131_v25 }
 0x992   :  { %1684 = vmatprep.subr.bf16.mxu1 %v3257_v23 }
 0x993   :  { %2995 = vmatpush3.bf16.msra.mxu0 %v3126_v45 }
 0x994   :  { %2996 = vmatprep.subr.bf16.mxu0 %v3254_v31 }
 0x995   :  { %1685 = vmatpush1.bf16.msra.mxu1 %v3132_v26 }
 0x996   :  { %1686 = vmatprep.subr.bf16.mxu1 %v3257_v23 }
 0x997   :  { %2997 = vmatpush3.bf16.msra.mxu0 %v3127_v35 }
 0x998   :  { %2998 = vmatprep.subr.bf16.mxu0 %v3254_v31 }
 0x999   :  { %1687 = vmatpush1.bf16.msra.mxu1 %v3133_v28 }
 0x99a   :  { %1688 = vmatprep.subr.bf16.mxu1 %v3257_v23 }
 0x99b   :  { %2999 = vmatpush3.bf16.msra.mxu0 %v3128_v42 }
 0x99c   :  { %3004 = vmatprep.subr.bf16.mxu0 %v3254_v31 }
 0x99d   :  { %1689 = vmatpush1.bf16.msra.mxu1 %v3134_v29 }
 0x99e   :  { %1690 = vmatprep.subr.bf16.mxu1 %v3257_v23 }
 0x9a1   :  { %1691 = vmatpush1.bf16.msra.mxu1 %v3135_v30 }
 0x9a2   :  { %1692 = vmatprep.subr.bf16.mxu1 %v3257_v23 }
 0x9a5   :  { %1693 = vmatpush1.bf16.msra.mxu1 %v3136_v32 }
 0x9a6   :  { %1694 = vmatprep.subr.bf16.mxu1 %v3257_v23 }
 0x9a9   :  { %1695 = vmatpush1.bf16.msra.mxu1 %v3137_v33 }
 0x9aa   :  { %1696 = vmatprep.subr.bf16.mxu1 %v3257_v23 }
 0x9ad   :  { %1697 = vmatpush1.bf16.msra.mxu1 %v3138_v34 }
 0x9ae   :  { %1698 = vmatprep.subr.bf16.mxu1 %v3257_v23 }
 0x9b1   :  { %1699 = vmatpush1.bf16.msra.mxu1 %v3139_v36 }
 0x9b2   :  { %1700 = vmatprep.subr.bf16.mxu1 %v3257_v23 }
 0x9b5   :  { %1701 = vmatpush1.bf16.msra.mxu1 %v3140_v37 }
 0x9b6   :  { %2184 = vmatprep.subr.bf16.mxu1 %v3257_v23 }
 0xa59   :  { %v2980_v60 = vpop.f32.mrb[16].mxu0 }
 0xa5a   :  { %v1356_v1 = vpop.f32.mrb[17].mxu0  ;;  %v1371_v11 = vpack.c.bf16 %v2980_v60, %v2980_v60 }
 0xa5b   :  { %v2981_v3 = vpop.f32.mrb[18].mxu0  ;;  %v2986_v62 = vpop.f32.mrb[16].mxu1 }
 0xa5c   :  { %v3712_v63 = vpop.f32.mrb[19].mxu0  ;;  %v1418_v4 = vpop.f32.mrb[17].mxu1  ;;  %v1433_v12 = vpack.c.bf16 %v2986_v62, %v2986_v62 }
 0xa5d   :  { %v1370_v2 = vpack.c.bf16 %v3712_v63, %v1356_v1  ;;  %v2987_v5 = vpop.f32.mrb[18].mxu1 }
 0xa5e   :  { %v3715_v6 = vpop.f32.mrb[19].mxu1 }
 0xa5f   :  { %v1373_v7 = vrot.slane %v1370_v2, 4  ;;  %v1432_v8 = vpack.c.bf16 %v3715_v6, %v1418_v4  ;;  %v2806_v9 = vpack.c.bf16 %v3715_v6, %v3712_v63  ;;  %v3151_v63 = vld [vmem:[%s3986_s7 + $0x20] sm:$0xff]   ;;  %v3152_v6 = vld [vmem:[%s3986_s7 + $0x28] sm:$0xff]  }
 0xa61   :  { %v1435_v10 = vrot.slane %v1432_v8, 4  ;;  %1374 = vrot.lane.b32.xlu0 %v1373_v7, %s3252_s0 }
 0xa63   :  { %1436 = vrot.lane.b32.xlu1 %v1435_v10, %s3252_s0 }
 0xa65   :  { %1377 = vrot.lane.b32.xlu0 %v1371_v11, %s3253_s5 }
 0xa67   :  { %1439 = vrot.lane.b32.xlu1 %v1433_v12, %s3253_s5 }
 0xad3   :  { %v1375_v13 = vpop.permute.xlu0 %1374 }
 0xad4   :  { %v1381_v17 = vsel %vm239_vm6, %v1370_v2, %v1375_v13 }
 0xad5   :  { %v1437_v15 = vpop.permute.xlu1 %1436 }
 0xad6   :  { %v1443_v18 = vsel %vm239_vm6, %v1432_v8, %v1437_v15 }
 0xad7   :  { %v1378_v16 = vpop.permute.xlu0 %1377 }
 0xad8   :  { %v1383_v20 = vsel %vm246_vm7, %v1381_v17, %v1378_v16  ;;  %v3141_v16 = vld [vmem:[%s3979_s19] sm:$0xff]   ;;  %v3142_v17 = vld [vmem:[%s3979_s19 + $0x8] sm:$0xff]  }
 0xad9   :  { %v1440_v19 = vpop.permute.xlu1 %1439 }
 0xada   :  { %v1445_v21 = vsel %vm246_vm7, %v1443_v18, %v1440_v19  ;;  %v3143_v18 = vld [vmem:[%s3979_s19 + $0x10] sm:$0xff]   ;;  %v3144_v19 = vld [vmem:[%s3979_s19 + $0x18] sm:$0xff]  }
 0xadb   :  { %v2725_v14 = vcombine.low %v1383_v20, %v1445_v21  ;;  %v2750_v20 = vld [vmem:[%s3982_s24] ss:$0 sm:$0xff] }
 0xadc   :  { %v2751_v21 = vld [vmem:[%s3983_s30] ss:$0 sm:$0xff] }
 0xadd   :  { %3001 = vmatmul.mubr.msk.bf16.vlgmr.msra.gmra.mrb[20].mxu0 %vm287_vm8, %v2725_v14 }
 0xade   :  { %3012 = vmatprep.mubr.msk.bf16.mxu0 %vm3255_vm9, %v3254_v31  ;;  %3005 = vmatpush3.bf16.msra.mxu0 %v3141_v16 }
 0xadf   :  { %3006 = vmatprep.subr.bf16.mxu0 %v3254_v31 }
 0xae2   :  { %3007 = vmatpush3.bf16.msra.mxu0 %v3142_v17 }
 0xae3   :  { %3008 = vmatprep.subr.bf16.mxu0 %v3254_v31 }
 0xae6   :  { %3009 = vmatpush3.bf16.msra.mxu0 %v3143_v18 }
 0xae7   :  { %3010 = vmatprep.subr.bf16.mxu0 %v3254_v31 }
 0xaea   :  { %3011 = vmatpush3.bf16.msra.mxu0 %v3144_v19 }
 0xaeb   :  { %3016 = vmatprep.subr.bf16.mxu0 %v3254_v31 }
 0xbb0   :  { %v1524_v49 = vpop.f32.mrb[20].mxu0 }
 0xbb1   :  { %v1537_v50 = vmul.f32 %v2733_v39, %v1524_v49  ;;  %v3002_v51 = vpop.f32.mrb[21].mxu0 }
 0xbb2   :  { %v1527_v52 = vpop.f32.mrb[22].mxu0 }
 0xbb3   :  { %v1545_v53 = vadd.f32 %v2734_v48, %v1537_v50  ;;  %v1538_v54 = vmul.f32 %v2733_v39, %v1527_v52  ;;  %v3003_v55 = vpop.f32.mrb[23].mxu0 }
 0xbb5   :  { %v1547_v56 = vmax.f32 %v1545_v53, 0.0  ;;  %v1546_v38 = vadd.f32 %v2734_v48, %v1538_v54 }
 0xbb7   :  { %v1549_v44 = vpack.c.bf16 %v1547_v56, %v1547_v56  ;;  %v1548_v59 = vmax.f32 %v1546_v38, 0.0 }
 0xbb9   :  { %v1552_v57 = vshrl.u32 %v1549_v44, 16  ;;  %v1555_v61 = vshll.u32 %v1549_v44, 16  ;;  %v1550_v58 = vpack.c.bf16 %v1548_v59, %v1548_v59  ;;  %1582 = vrot.lane.b32.xlu0 %v1549_v44, %s3253_s5 }
 0xbbb   :  { %v1569_v43 = vrot.slane %v1555_v61, 1  ;;  %v1559_v46 = vshrl.u32 %v1550_v58, 16  ;;  %v1562_v0 = vshll.u32 %v1550_v58, 16  ;;  %1584 = vrot.lane.b32.xlu1 %v1550_v58, %s3253_s5  ;;  %v1554_v40 = vrot.slane %v1552_v57, 7 }
 0xbbd   :  { %v1570_v45 = vor.u32 %v1569_v43, %v1552_v57  ;;  %v1571_v35 = vrot.slane %v1562_v0, 1  ;;  %v1557_v42 = vor.u32 %v1555_v61, %v1554_v40  ;;  %v1561_v60 = vrot.slane %v1559_v46, 7 }
 0xbbf   :  { %v1572_v3 = vor.u32 %v1571_v35, %v1559_v46  ;;  %v1564_v62 = vor.u32 %v1562_v0, %v1561_v60  ;;  %v1578_v4 = vsel %vm3760_vm15, %v1570_v45, 0  ;;  %v1567_v8 = vsel %vm3491_vm5, 0, %v1557_v42  ;;  %v1295_v46 = vld [vmem:[%s3984_s6] sm:$0x3] }
 0xbc0   :  { %v1835_v0 = vsel %vm1833_vm0, %v1295_v46, 0  ;;  %v3145_v60 = vld [vmem:[%s3985_s27] sm:$0xff]  }
 0xbc1   :  { %v1579_v2 = vsel %vm3760_vm15, %v1572_v3, 0  ;;  %v1568_v11 = vsel %vm3491_vm5, 0, %v1564_v62 }
 0xbc2   :  { %v2736_v5 = vcombine.low %v1578_v4, %v1579_v2  ;;  %v3146_v4 = vld [vmem:[%s3985_s27 + $0x8] sm:$0xff]   ;;  %v3147_v2 = vld [vmem:[%s3986_s7] sm:$0xff]  }
 0xbc4   :  { %2749 = vmatprep.mubr.msk.bf16.mxu1 %vm246_vm7, %v2736_v5  ;;  %v3148_v5 = vld [vmem:[%s3986_s7 + $0x8] sm:$0xff]  }
 0xc2b   :  { %v1583_v7 = vpop.permute.xlu0 %1582 }
 0xc2c   :  { %v1588_v12 = vsel %vm246_vm7, %v1567_v8, %v1583_v7  ;;  %v3149_v7 = vld [vmem:[%s3986_s7 + $0x10] sm:$0xff]   ;;  %v3150_v8 = vld [vmem:[%s3986_s7 + $0x18] sm:$0xff]  }
 0xc2d   :  { %v1585_v10 = vpop.permute.xlu1 %1584 }
 0xc2e   :  { %v1591_v13 = vsel %vm246_vm7, %v1568_v11, %v1585_v10  ;;  %v3154_v10 = vld [vmem:[%s3986_s7 + $0x38] sm:$0xff]   ;;  %v3155_v11 = vld [vmem:[%s3986_s7 + $0x40] sm:$0xff]  }
 0xc2f   :  { %v2735_v15 = vcombine.low %v1588_v12, %v1591_v13  ;;  %v3156_v12 = vld [vmem:[%s3986_s7 + $0x48] sm:$0xff]   ;;  %v3157_v13 = vld [vmem:[%s3986_s7 + $0x50] sm:$0xff]  }
 0xc31   :  { %1711 = vmatmul.mubr.bf16.vlgmr.msra.gmra.mrb[20].mxu1 %v2735_v15 }
 0xc32   :  { %2185 = vmatpush1.bf16.msra.mxu1 %v3147_v2 }
 0xc33   :  { %2186 = vmatprep.subr.bf16.mxu1 %v3257_v23 }
 0xc36   :  { %2187 = vmatpush1.bf16.msra.mxu1 %v3148_v5 }
 0xc37   :  { %2188 = vmatprep.subr.bf16.mxu1 %v3257_v23 }
 0xc3a   :  { %2189 = vmatpush1.bf16.msra.mxu1 %v3149_v7 }
 0xc3b   :  { %2190 = vmatprep.subr.bf16.mxu1 %v3257_v23 }
 0xc3e   :  { %2191 = vmatpush1.bf16.msra.mxu1 %v3150_v8 }
 0xc3f   :  { %2192 = vmatprep.subr.bf16.mxu1 %v3257_v23 }
 0xc42   :  { %2193 = vmatpush1.bf16.msra.mxu1 %v3151_v63 }
 0xc43   :  { %2194 = vmatprep.subr.bf16.mxu1 %v3257_v23 }
 0xc46   :  { %2195 = vmatpush1.bf16.msra.mxu1 %v3152_v6 }
 0xc47   :  { %2196 = vmatprep.subr.bf16.mxu1 %v3257_v23 }
 0xd04   :  { %v1712_v14 = vpop.f32.mrb[20].mxu1 }
 0xd05   :  { %v1725_v22 = vmul.f32 %v2750_v20, %v1712_v14  ;;  %v1714_v24 = vpop.f32.mrb[21].mxu1 }
 0xd06   :  { %v1715_v25 = vpop.f32.mrb[22].mxu1 }
 0xd07   :  { %v3785_v26 = vadd.f32 %v2751_v21, %v1725_v22  ;;  %v1726_v28 = vmul.f32 %v2750_v20, %v1715_v25  ;;  %v1717_v29 = vpop.f32.mrb[23].mxu1 }
 0xd08   :  { %v2763_v29 = vld [vmem:[%s3987_s10] ss:$0 sm:$0xff] }
 0xd09   :  { %v1735_v30 = vsel %vm246_vm7, %v3785_v26, 0.0  ;;  %v3789_v32 = vadd.f32 %v2751_v21, %v1726_v28 }
 0xd0a   :  { %v1736_v33 = vrot.slane %v1735_v30, 4 }
 0xd0b   :  { %v1742_v34 = vsel %vm246_vm7, %v3789_v32, 0.0 }
 0xd0c   :  { %v1737_v36 = vadd.f32 %v1736_v33, %v1735_v30  ;;  %v1743_v37 = vrot.slane %v1742_v34, 4  ;;  %v3158_v33 = vld [vmem:[%s3986_s7 + $0x58] sm:$0xff]  }
 0xd0e   :  { %v1738_v39 = vrot.slane %v1737_v36, 2  ;;  %v1744_v48 = vadd.f32 %v1743_v37, %v1742_v34 }
 0xd10   :  { %v1739_v49 = vadd.f32 %v1738_v39, %v1737_v36  ;;  %v1745_v50 = vrot.slane %v1744_v48, 2  ;;  %v2764_v39 = vld [vmem:[%s3988_s11] ss:$0 sm:$0xff] }
 0xd12   :  { %v1740_v51 = vrot.slane %v1739_v49, 1  ;;  %v1746_v52 = vadd.f32 %v1745_v50, %v1744_v48 }
 0xd14   :  { %v1741_v53 = vadd.f32 %v1740_v51, %v1739_v49  ;;  %v1747_v54 = vrot.slane %v1746_v52, 1 }
 0xd16   :  { %v1750_v55 = vmul.f32 0.125, %v1741_v53  ;;  %v1748_v56 = vadd.f32 %v1747_v54, %v1746_v52 }
 0xd18   :  { %v1752_v38 = vpack.c.bf16 %v1750_v55, %v1750_v55  ;;  %v1751_v44 = vmul.f32 0.125, %v1748_v56 }
 0xd1a   :  { %v1753_v59 = vpack.c.bf16 %v1751_v44, %v1751_v44  ;;  %v1756_v57 = vunpack.c.l.b16 %v1752_v38 }
 0xd1c   :  { %v1757_v61 = vunpack.c.l.b16 %v1753_v59 }
 0xd1e   :  { %v1758_v58 = vsel %vm551_vm10, %v1757_v61, %v1756_v57 }
 0xd1f   :  { %v1759_v43 = vpack.c.b16 %v1758_v58, %v1758_v58 }
 0xd21   :  { %3013 = vmatmul.mubr.msk.bf16.vlgmr.msra.gmra.mrb[24].mxu0 %vm246_vm7, %v1759_v43 }
 0xd22   :  { %3018 = vmatprep.mubr.msk.bf16.mxu0 %vm3255_vm9, %v3254_v31  ;;  %3017 = vmatpush3.bf16.msra.mxu0 %v1835_v0 }
 0xd23   :  { %3022 = vmatprep.subr.bf16.mxu0 %v3254_v31 }
 0xdf4   :  { %v1821_v40 = vpop.f32.mrb[24].mxu0 }
 0xdf5   :  { %v1827_v45 = vmax.f32 %v1821_v40, 0.0  ;;  %v3014_v35 = vpop.f32.mrb[25].mxu0 }
 0xdf6   :  { %v1824_v42 = vpop.f32.mrb[26].mxu0 }
 0xdf7   :  { %v1828_v3 = vpack.c.bf16 %v1827_v45, %v1827_v45  ;;  %v3015_v62 = vpop.f32.mrb[27].mxu0 }
 0xdf9   :  { %3019 = vmatmul.mubr.msk.bf16.vlgmr.msra.gmra.mrb[28].mxu0 %vm1829_vm1, %v1828_v3 }
 0xdfa   :  { %3023 = vmatpush3.bf16.msra.mxu0 %v3145_v60  ;;  %3026 = vmatprep.mubr.msk.bf16.mxu0 %vm3255_vm9, %v3254_v31 }
 0xdfb   :  { %3024 = vmatprep.subr.bf16.mxu0 %v3254_v31 }
 0xdfe   :  { %3025 = vmatpush3.bf16.msra.mxu0 %v3146_v4 }
 0xdff   :  { %2369 = vmatprep.subr.bf16.mxu0 %v3257_v23 }
 0xe01   :  { %3027 = vmatmul.mubr.msk.bf16.vlgmr.msra.gmra.mrb[32].mxu0 %vm239_vm6, %v2806_v9  ;;  %v3153_v9 = vld [vmem:[%s3986_s7 + $0x30] sm:$0xff]  }
 0xe02   :  { %2197 = vmatpush1.bf16.msra.mxu1 %v3153_v9 }
 0xe03   :  { %2198 = vmatprep.subr.bf16.mxu1 %v3257_v23 }
 0xe06   :  { %2199 = vmatpush1.bf16.msra.mxu1 %v3154_v10 }
 0xe07   :  { %2200 = vmatprep.subr.bf16.mxu1 %v3257_v23 }
 0xe0a   :  { %2201 = vmatpush1.bf16.msra.mxu1 %v3155_v11  ;;  %v3159_v11 = vld [vmem:[%s3989_s15] sm:$0xff]  }
 0xe0b   :  { %2202 = vmatprep.subr.bf16.mxu1 %v3257_v23  ;;  %2370 = vmatpush1.bf16.msra.mxu0 %v3159_v11 }
 0xe0c   :  { %2371 = vmatprep.subr.bf16.mxu0 %v3257_v23 }
 0xe0e   :  { %2203 = vmatpush1.bf16.msra.mxu1 %v3156_v12  ;;  %v3160_v12 = vld [vmem:[%s3989_s15 + $0x8] sm:$0xff]  }
 0xe0f   :  { %2204 = vmatprep.subr.bf16.mxu1 %v3257_v23  ;;  %2372 = vmatpush1.bf16.msra.mxu0 %v3160_v12 }
 0xe10   :  { %2373 = vmatprep.subr.bf16.mxu0 %v3257_v23 }
 0xe12   :  { %2205 = vmatpush1.bf16.msra.mxu1 %v3157_v13  ;;  %v3161_v13 = vld [vmem:[%s3989_s15 + $0x10] sm:$0xff]  }
 0xe13   :  { %2206 = vmatprep.subr.bf16.mxu1 %v3257_v23  ;;  %2374 = vmatpush1.bf16.msra.mxu0 %v3161_v13 }
 0xe14   :  { %2375 = vmatprep.subr.bf16.mxu0 %v3257_v23 }
 0xe16   :  { %2207 = vmatpush1.bf16.msra.mxu1 %v3158_v33 }
 0xe17   :  { %3030 = vmatprep.subr.bf16.mxu1 %v3254_v31 }
 0xecc   :  { %v1871_v15 = vpop.f32.mrb[28].mxu0 }
 0xecd   :  { %v2758_v16 = vmul.f32 -1.442695, %v1871_v15  ;;  %v3020_v17 = vpop.f32.mrb[29].mxu0  ;;  %v3162_v15 = vld [vmem:[%s3989_s15 + $0x18] sm:$0xff]  }
 0xece   :  { %v1874_v18 = vpop.f32.mrb[30].mxu0  ;;  %2376 = vmatpush1.bf16.msra.mxu0 %v3162_v15  ;;  %v3164_v17 = vld [vmem:[%s3989_s15 + $0x28] sm:$0xff]  }
 0xecf   :  { %3183 = vpow2.f32 %v2758_v16  ;;  %v3021_v19 = vpop.f32.mrb[31].mxu0  ;;  %v3163_v16 = vld [vmem:[%s3989_s15 + $0x20] sm:$0xff]   ;;  %2377 = vmatprep.subr.bf16.mxu0 %v3257_v23  ;;  %v3165_v18 = vld [vmem:[%s3989_s15 + $0x30] sm:$0xff]  }
 0xed0   :  { %v3166_v19 = vld [vmem:[%s3989_s15 + $0x38] sm:$0xff]  }
 0xed2   :  { %2378 = vmatpush1.bf16.msra.mxu0 %v3163_v16 }
 0xed3   :  { %2379 = vmatprep.subr.bf16.mxu0 %v3257_v23 }
 0xed4   :  { %v1970_v20 = vpop.f32.mrb[32].mxu0 }
 0xed5   :  { %v3028_v21 = vpop.f32.mrb[33].mxu0  ;;  %v1983_v36 = vmul.f32 %v2763_v29, %v1970_v20  ;;  %v3167_v20 = vld [vmem:[%s3989_s15 + $0x40] sm:$0xff]  }
 0xed6   :  { %v1973_v14 = vpop.f32.mrb[34].mxu0  ;;  %2380 = vmatpush1.bf16.msra.mxu0 %v3164_v17  ;;  %v3168_v21 = vld [vmem:[%s3989_s15 + $0x48] sm:$0xff]  }
 0xed7   :  { %v3029_v22 = vpop.f32.mrb[35].mxu0  ;;  %v1984_v50 = vmul.f32 %v2763_v29, %v1973_v14  ;;  %v1991_v52 = vadd.f32 %v2764_v39, %v1983_v36  ;;  %2381 = vmatprep.subr.bf16.mxu0 %v3257_v23  ;;  %v3169_v14 = vld [vmem:[%s3989_s15 + $0x50] sm:$0xff]  }
 0xed8   :  { %v3170_v22 = vld [vmem:[%s3989_s15 + $0x58] sm:$0xff]  }
 0xed9   :  { %v3184_v24 = vpop.eup %3183  ;;  %v1992_v56 = vadd.f32 %v2764_v39, %v1984_v50 }
 0xeda   :  { %v1880_v25 = vadd.f32 1.0, %v3184_v24  ;;  %2382 = vmatpush1.bf16.msra.mxu0 %v3165_v18  ;;  %v2780_v24 = vld [vmem:[%s3990_s16] ss:$0 sm:$0xff] }
 0xedb   :  { %2383 = vmatprep.subr.bf16.mxu0 %v3257_v23 }
 0xedc   :  { %3185 = vrcp.f32 %v1880_v25  ;;  %v2781_v25 = vld [vmem:[%s3991_s18] ss:$0 sm:$0xff] }
 0xede   :  { %2384 = vmatpush1.bf16.msra.mxu0 %v3166_v19 }
 0xedf   :  { %2385 = vmatprep.subr.bf16.mxu0 %v3257_v23 }
 0xee2   :  { %2386 = vmatpush1.bf16.msra.mxu0 %v3167_v20 }
 0xee3   :  { %2387 = vmatprep.subr.bf16.mxu0 %v3257_v23 }
 0xee6   :  { %v3186_v28 = vpop.eup %3185  ;;  %2388 = vmatpush1.bf16.msra.mxu0 %v3168_v21 }
 0xee7   :  { %v1890_v30 = vrot.slane %v3186_v28, %v3567_v41  ;;  %2389 = vmatprep.subr.bf16.mxu0 %v3257_v23 }
 0xee9   :  { %v1898_v34 = vrot.slane %v1890_v30, %v3567_v41  ;;  %v1891_v37 = vcombine.high %v1890_v30, %v1890_v30 }
 0xeea   :  { %2390 = vmatpush1.bf16.msra.mxu0 %v3169_v14 }
 0xeeb   :  { %v1909_v48 = vrot.slane %v1898_v34, %v3570_v47  ;;  %v1905_v49 = vrot.slane %v1891_v37, %v3567_v41  ;;  %2391 = vmatprep.subr.bf16.mxu0 %v3257_v23 }
 0xeed   :  { %v1916_v51 = vmul.f32 %v1909_v48, %v3785_v26  ;;  %v1913_v53 = vrot.slane %v1905_v49, %v3570_v47 }
 0xeee   :  { %2392 = vmatpush1.bf16.msra.mxu0 %v3170_v22 }
 0xeef   :  { %v1993_v54 = vadd.f32 %v1991_v52, %v1916_v51  ;;  %v1917_v55 = vmul.f32 %v1913_v53, %v3789_v32  ;;  %3042 = vmatprep.subr.bf16.mxu0 %v3254_v31 }
 0xef1   :  { %v3844_v38 = vmax.f32 %v1993_v54, 0.0  ;;  %v1994_v44 = vadd.f32 %v1992_v56, %v1917_v55 }
 0xef3   :  { %v3846_v59 = vmax.f32 %v1994_v44, 0.0  ;;  %v2058_v57 = vpack.c.bf16 %v3844_v38, %v3844_v38 }
 0xef5   :  { %2088 = vrot.lane.b32.xlu0 %v2058_v57, %s3253_s5  ;;  %v2061_v61 = vshrl.u32 %v2058_v57, 16  ;;  %v2064_v58 = vshll.u32 %v2058_v57, 16  ;;  %v2059_v26 = vpack.c.bf16 %v3846_v59, %v3846_v59 }
 0xef7   :  { %v2078_v43 = vrot.slane %v2064_v58, 1  ;;  %2090 = vrot.lane.b32.xlu1 %v2059_v26, %s3253_s5  ;;  %v2068_v32 = vshrl.u32 %v2059_v26, 16  ;;  %v2071_v46 = vshll.u32 %v2059_v26, 16  ;;  %v2063_v0 = vrot.slane %v2061_v61, 7 }
 0xef9   :  { %v2080_v40 = vrot.slane %v2071_v46, 1  ;;  %v2079_v45 = vor.u32 %v2078_v43, %v2061_v61  ;;  %v2066_v35 = vor.u32 %v2064_v58, %v2063_v0  ;;  %v2070_v42 = vrot.slane %v2068_v32, 7 }
 0xefb   :  { %v2081_v60 = vor.u32 %v2080_v40, %v2068_v32  ;;  %v2073_v3 = vor.u32 %v2071_v46, %v2070_v42  ;;  %v2084_v62 = vsel %vm3760_vm15, %v2079_v45, 0  ;;  %v2076_v7 = vsel %vm3491_vm5, 0, %v2066_v35 }
 0xefd   :  { %v2085_v4 = vsel %vm3760_vm15, %v2081_v60, 0  ;;  %v2077_v63 = vsel %vm3491_vm5, 0, %v2073_v3 }
 0xefe   :  { %v2766_v2 = vcombine.low %v2084_v62, %v2085_v4  ;;  %v3171_v62 = vld [vmem:[%s3443_s20] sm:$0xff]   ;;  %v3172_v4 = vld [vmem:[%s3443_s20 + $0x8] sm:$0xff]  }
 0xf00   :  { %2779 = vmatprep.mubr.msk.bf16.mxu1 %vm246_vm7, %v2766_v2  ;;  %v3174_v2 = vld [vmem:[%s3443_s20 + $0x18] sm:$0xff]  }
 0xf67   :  { %v2089_v5 = vpop.permute.xlu0 %2088 }
 0xf68   :  { %v2094_v6 = vsel %vm246_vm7, %v2076_v7, %v2089_v5  ;;  %v2797_v5 = vld [vmem:[%s3992_s22] ss:$0 sm:$0xff] }
 0xf69   :  { %v2091_v8 = vpop.permute.xlu1 %2090  ;;  %v2798_v7 = vld [vmem:[%s3438_s9] ss:$0 sm:$0xff]  ;;  %s3258_s9 = smov [#allocation2]  }
 0xf6a   :  { %v2097_v9 = vsel %vm246_vm7, %v2077_v63, %v2091_v8 }
 0xf6b   :  { %v2765_v10 = vcombine.low %v2094_v6, %v2097_v9 }
 0xf6d   :  { %2217 = vmatmul.mubr.bf16.vlgmr.msra.gmra.mrb[24].mxu1 %v2765_v10 }
 0xf6e   :  { %3038 = vmatprep.mubr.msk.bf16.mxu1 %vm3255_vm9, %v3254_v31  ;;  %3031 = vmatpush3.bf16.msra.mxu1 %v3171_v62 }
 0xf6f   :  { %3032 = vmatprep.subr.bf16.mxu1 %v3254_v31 }
 0xf72   :  { %3033 = vmatpush3.bf16.msra.mxu1 %v3172_v4 }
 0xf73   :  { %3034 = vmatprep.subr.bf16.mxu1 %v3254_v31 }
 0xf76   :  { %3035 = vmatpush3.bf16.msra.mxu1 %v3173_v27 }
 0xf77   :  { %3036 = vmatprep.subr.bf16.mxu1 %v3254_v31 }
 0xf7a   :  { %3037 = vmatpush3.bf16.msra.mxu1 %v3174_v2 }
0x1040   :  { %v2218_v28 = vpop.f32.mrb[24].mxu1 }
0x1041   :  { %v2231_v29 = vmul.f32 %v2780_v24, %v2218_v28  ;;  %v2220_v30 = vpop.f32.mrb[25].mxu1 }
0x1042   :  { %v2221_v33 = vpop.f32.mrb[26].mxu1 }
0x1043   :  { %v2239_v34 = vadd.f32 %v2781_v25, %v2231_v29  ;;  %v2232_v36 = vmul.f32 %v2780_v24, %v2221_v33  ;;  %v2223_v37 = vpop.f32.mrb[27].mxu1 }
0x1045   :  { %v2241_v39 = vmax.f32 %v2239_v34, 0.0  ;;  %v2240_v48 = vadd.f32 %v2781_v25, %v2232_v36 }
0x1047   :  { %v2243_v49 = vpack.c.bf16 %v2241_v39, %v2241_v39  ;;  %v2242_v50 = vmax.f32 %v2240_v48, 0.0 }
0x1049   :  { %v2246_v51 = vshrl.u32 %v2243_v49, 16  ;;  %v2249_v52 = vshll.u32 %v2243_v49, 16  ;;  %v2244_v23 = vpack.c.bf16 %v2242_v50, %v2242_v50  ;;  %2273 = vrot.lane.b32.xlu0 %v2243_v49, %s3253_s5  ;;  %v2057_v50 = vld [vmem:[%s3448_s12] sm:$0x3]  ;;  %s2621_s12 = sshll.u32 %s3258_s9, 4  ;;  %s2622_s12 = int_to_ptr.vmem [resolvable:$true] %s2621_s12 }
0x104a   :  { %s3191_s20 = scalar_lea.vmem %s2622_s12, 128  ;;  %p3196_p1 = scmp.lt.s32.totalorder %s2622_s12, %s2622_s12 }
0x104b   :  { %v2263_v53 = vrot.slane %v2249_v52, 1  ;;  %v2253_v54 = vshrl.u32 %v2244_v23, 16  ;;  %v2256_v55 = vshll.u32 %v2244_v23, 16  ;;  %2275 = vrot.lane.b32.xlu1 %v2244_v23, %s3253_s5  ;;  %v2248_v56 = vrot.slane %v2246_v51, 7  ;;  %p3192_p0 = scmp.ne.s32.totalorder %s2622_s12, %s3191_s20  ;;  %p3197_p2 = scmp.lt.s32.totalorder %s3191_s20, %s3191_s20 }
0x104d   :  { %v2264_v44 = vor.u32 %v2263_v53, %v2246_v51  ;;  %v2265_v57 = vrot.slane %v2256_v55, 1  ;;  %v2251_v61 = vor.u32 %v2249_v52, %v2248_v56  ;;  %v2255_v58 = vrot.slane %v2253_v54, 7  ;;  %p3198_p3 = por %p3197_p2, %p3196_p1 }
0x104e   :  { %v2523_v51 = vsel %vm1833_vm0, %v2057_v50, 0 }
0x104f   :  { %v2266_v26 = vor.u32 %v2265_v57, %v2253_v54  ;;  %v2258_v43 = vor.u32 %v2256_v55, %v2255_v58  ;;  %v2269_v32 = vsel %vm3760_vm15, %v2264_v44, 0  ;;  %v2261_v45 = vsel %vm3491_vm5, 0, %v2251_v61  ;;  %p3199_p4 = pnand %p3198_p3, %p3192_p0 }
0x1051   :  { %v2270_v46 = vsel %vm3760_vm15, %v2266_v26, 0  ;;  %v2262_v42 = vsel %vm3491_vm5, 0, %v2258_v43 }
0x1052   :  { %v2783_v0 = vcombine.low %v2269_v32, %v2270_v46 }
0x1054   :  { %2796 = vmatprep.mubr.msk.bf16.mxu0 %vm246_vm7, %v2783_v0 }
0x10bb   :  { %v2274_v40 = vpop.permute.xlu0 %2273 }
0x10bc   :  { %v2279_v60 = vsel %vm246_vm7, %v2261_v45, %v2274_v40 }
0x10bd   :  { %v2276_v35 = vpop.permute.xlu1 %2275 }
0x10be   :  { %v2282_v1 = vsel %vm246_vm7, %v2262_v42, %v2276_v35 }
0x10bf   :  { %v2782_v3 = vcombine.low %v2279_v60, %v2282_v1 }
0x10c1   :  { %2402 = vmatmul.mubr.bf16.vlgmr.msra.gmra.mrb[36].mxu0 %v2782_v3 }
0x10c2   :  { %3044 = vmatprep.mubr.msk.bf16.mxu0 %vm3255_vm9, %v3254_v31  ;;  %3043 = vmatpush3.bf16.msra.mxu0 %v2523_v51 }
0x1194   :  { %v2403_v8 = vpop.f32.mrb[36].mxu0 }
0x1195   :  { %v2416_v63 = vmul.f32 %v2797_v5, %v2403_v8  ;;  %v2405_v6 = vpop.f32.mrb[37].mxu0 }
0x1196   :  { %v2406_v9 = vpop.f32.mrb[38].mxu0 }
0x1197   :  { %v2424_v10 = vadd.f32 %v2798_v7, %v2416_v63  ;;  %v2417_v11 = vmul.f32 %v2797_v5, %v2406_v9  ;;  %v2408_v12 = vpop.f32.mrb[39].mxu0 }
0x1199   :  { %v2426_v13 = vsel %vm246_vm7, %v2424_v10, 0.0  ;;  %v2425_v15 = vadd.f32 %v2798_v7, %v2417_v11 }
0x119a   :  { %v2427_v16 = vrot.slane %v2426_v13, 4 }
0x119b   :  { %v2433_v17 = vsel %vm246_vm7, %v2425_v15, 0.0 }
0x119c   :  { %v2428_v18 = vadd.f32 %v2427_v16, %v2426_v13  ;;  %v2434_v19 = vrot.slane %v2433_v17, 4 }
0x119e   :  { %v2429_v31 = vrot.slane %v2428_v18, 2  ;;  %v2435_v20 = vadd.f32 %v2434_v19, %v2433_v17 }
0x11a0   :  { %v2430_v21 = vadd.f32 %v2429_v31, %v2428_v18  ;;  %v2436_v14 = vrot.slane %v2435_v20, 2 }
0x11a2   :  { %v2431_v22 = vrot.slane %v2430_v21, 1  ;;  %v2437_v24 = vadd.f32 %v2436_v14, %v2435_v20 }
0x11a4   :  { %v2432_v25 = vadd.f32 %v2431_v22, %v2430_v21  ;;  %v2438_v28 = vrot.slane %v2437_v24, 1 }
0x11a6   :  { %v2440_v29 = vmul.f32 0.125, %v2432_v25  ;;  %v2439_v30 = vadd.f32 %v2438_v28, %v2437_v24 }
0x11a8   :  { %v2442_v33 = vpack.c.bf16 %v2440_v29, %v2440_v29  ;;  %v2441_v34 = vmul.f32 0.125, %v2439_v30 }
0x11aa   :  { %v2443_v36 = vpack.c.bf16 %v2441_v34, %v2441_v34  ;;  %v2446_v37 = vunpack.c.l.b16 %v2442_v33 }
0x11ac   :  { %v2447_v39 = vunpack.c.l.b16 %v2443_v36 }
0x11ae   :  { %v2448_v48 = vsel %vm551_vm10, %v2447_v39, %v2446_v37 }
0x11af   :  { %v2449_v49 = vpack.c.b16 %v2448_v48, %v2448_v48 }
0x11b1   :  { %3039 = vmatmul.mubr.msk.bf16.vlgmr.msra.gmra.mrb[28].mxu1 %vm246_vm7, %v2449_v49 }
0x1284   :  { %v2511_v52 = vpop.f32.mrb[28].mxu1 }
0x1285   :  { %v2517_v23 = vmax.f32 %v2511_v52, 0.0  ;;  %v3040_v53 = vpop.f32.mrb[29].mxu1 }
0x1286   :  { %v2514_v54 = vpop.f32.mrb[30].mxu1 }
0x1287   :  { %v2518_v55 = vpack.c.bf16 %v2517_v23, %v2517_v23  ;;  %v3041_v56 = vpop.f32.mrb[31].mxu1 }
0x1289   :  { %3045 = vmatmul.mubr.msk.bf16.vlgmr.msra.gmra.mrb[40].mxu0 %vm1829_vm1, %v2518_v55 }
0x135c   :  { %v2559_v44 = vpop.f32.mrb[40].mxu0 }
0x135d   :  { %v2805_v57 = vmul.f32 -1.442695, %v2559_v44  ;;  %v3046_v61 = vpop.f32.mrb[41].mxu0 }
0x135e   :  { %v2562_v58 = vpop.f32.mrb[42].mxu0 }
0x135f   :  { %3187 = vpow2.f32 %v2805_v57  ;;  %v3047_v26 = vpop.f32.mrb[43].mxu0 }
0x1369   :  { %v3188_v43 = vpop.eup %3187 }
0x136a   :  { %v2568_v32 = vadd.f32 1.0, %v3188_v43 }
0x136c   :  { %3189 = vrcp.f32 %v2568_v32 }
0x1376   :  { %v3190_v46 = vpop.eup %3189 }
0x1377   :  { %v2578_v0 = vrot.slane %v3190_v46, %v3567_v41 }
0x1379   :  { %v2579_v40 = vcombine.high %v2578_v0, %v2578_v0  ;;  %v2586_v45 = vrot.slane %v2578_v0, %v3567_v41 }
0x137b   :  { %v2593_v35 = vrot.slane %v2579_v40, %v3567_v41  ;;  %v2597_v42 = vrot.slane %v2586_v45, %v3570_v47 }
0x137d   :  { %v2601_v60 = vrot.slane %v2593_v35, %v3570_v47  ;;  %v2604_v1 = vmul.f32 %v2597_v42, %v2424_v10 }
0x137f   :  { %v2605_v3 = vmul.f32 %v2601_v60, %v2425_v15  ;;  %v2606_v62 = vadd.f32 %v2604_v1, %v3844_v38 }
0x1381   :  { %v2607_v4 = vadd.f32 %v2605_v3, %v3846_v59  ;;  %v2608_v27 = vmax.f32 %v2606_v62, 0.0 }
0x1383   :  { %v2609_v2 = vmax.f32 %v2607_v4, 0.0  ;;  %v2610_v5 = vsel %vm246_vm7, %v2608_v27, 0.0 }
0x1385   :  { %v2611_v7 = vsel %vm246_vm7, %v2609_v2, 0.0 }
0x1386   :  { %v2810_v8 = vpack.c.bf16 %v2611_v7, %v2610_v5 }
0x1388   :  { %2811 = vst [vmem:[#allocation2] sm:$0xff] %v2810_v8  }
0x1389   :  { %3202 = shalt.err (!%p3199_p4)
}
0x138a   :  { %s3203_s23 = scalar_lea.hbm %s3453_s4, 128 }
0x138b   :  { %p3204_p5 = scmp.ne.s32.totalorder %s3453_s4, %s3203_s23  ;;  %p3207_p6 = scmp.lt.u32.totalorder %s3203_s23, %s3453_s4 }
0x138d   :  { %p3209_p7 = pnand %p3207_p6, %p3204_p5 }
0x138f   :  { %3212 = shalt.err (!%p3209_p7)
}
0x1390   :  { %s3259_s26 = smov 4  }
0x1391   :  { %2627 = dma.vmem_to_hbm [thread:$0]  %s2622_s12, 128, %s3453_s4, [#allocation3], %s3253_s5, %s3253_s5, %s3259_s26  }
0x1392   :  { %3213 = dma.done.wait [#allocation3], 128  }
0x1393   :  { %3214 = vsyncadd [#allocation3], 4294967168 }
0x1394   :  { %2631 = vsyncpa [#allocation3], 1 }

</bundles_post_ra>
